<compile_context>
chip_gen: v7x
topology: tpu7x:2x2x1
jax: 0.10.0
libtpu: 0.0.40
codegen_flags: <defaults>
</compile_context>

<pallas_src>
import functools

import jax
import jax.numpy as jnp
from jax.experimental import pallas as pl
from jax.experimental.pallas import tpu as pltpu


def _round_up(n, m):
    return ((n + m - 1) // m) * m


# -----------------------------------------------------------------------------
# Kernel
# -----------------------------------------------------------------------------
def seq2seq_kernel(xin_ref,      # ((t_enc+1)*S, IP)  encoder steps (time-major) then dec step 0
                   w_i_ref,      # (IP, G)   packed [W_ir | W_iz | W_in | 0]
                   w_h_ref,      # (H,  G)   packed [W_hr | W_hz | W_hn | 0]
                   w_dec_ref,    # (H,  2G+IP)  [W_h_packed | W_fc@W_i_packed | W_fc]
                   b_i_ref,      # (1,  G)   [b_ir+b_hr | b_iz+b_hz | b_in | 0]
                   b_hn_ref,     # (1,  H)
                   b_fc_ref,     # (1,  IP)
                   b_fcwi_ref,   # (1,  G)   b_fc @ W_i (packed)
                   out_ref,      # (t_dec*B, IP)
                   *, t_enc, t_dec, batch, hidden, rows_per_step):
    f32 = jnp.float32
    B, H, S = batch, hidden, rows_per_step
    G = w_i_ref.shape[1]          # packed gate lanes (128)
    IP = b_fc_ref.shape[1]        # padded input/output feature lanes (128)

    # One matmul projects every encoder step AND decoder step 0 through W_i, with the
    # fused r/z (b_i + b_h) and n (b_in) biases added to the whole slab in one shot.
    gi_all = (jnp.dot(xin_ref[...], w_i_ref[...], preferred_element_type=f32)
              + b_i_ref[...])                                     # ((t_enc+1)*S, G)

    # Hoisted bias broadcasts (JAX does not CSE broadcast_in_dim inside loops).
    b_hn = jnp.broadcast_to(b_hn_ref[...], (B, H))
    b_fc = jnp.broadcast_to(b_fc_ref[...], (B, IP))
    b_fcwi = jnp.broadcast_to(b_fcwi_ref[...], (B, G))

    def gru_gates(gi, gh, h):
        """torch.nn.GRUCell gate math on packed [r|z|n] lanes.

        gi already contains x @ W_i plus the fused biases; gh = h @ W_h (packed).
        r,z share one sigmoid push; gate slices are static 32-lane slices.
        """
        rz = jax.nn.sigmoid(gi[:, :2 * H] + gh[:, :2 * H])
        r, z = rz[:, :H], rz[:, H:2 * H]
        n = jnp.tanh(gi[:, 2 * H:3 * H] + r * (gh[:, 2 * H:3 * H] + b_hn))
        return (1.0 - z) * n + z * h

    # ---- encoder: only h @ W_h remains on the serial chain ----------------------
    h = jnp.zeros((B, H), f32)
    for i in range(t_enc):                                        # static unroll
        gi = gi_all[i * S:i * S + B, :]                           # group-aligned rows
        gh = jnp.dot(h, w_h_ref[...], preferred_element_type=f32)
        h = gru_gates(gi, gh, h)

    # ---- decoder with sampling-based feedback -----------------------------------
    # Feedback fold:  out_t   = inp_t + h_{t+1} @ W_fc + b_fc
    #                 gi_{t+1}= out_t @ W_i + b_i = gi_t + h_{t+1}@(W_fc@W_i) + b_fc@W_i
    # so each step issues ONE dependent matmul h_{t+1} @ [W_h | W_fc@W_i | W_fc] that
    # simultaneously yields the next step's gh, the gi update and the fc output term.
    inp = xin_ref[t_enc * S:t_enc * S + B, :]                     # decoder input step 0
    gi = gi_all[t_enc * S:t_enc * S + B, :]
    gh = jnp.dot(h, w_h_ref[...], preferred_element_type=f32)     # gh for decoder step 0
    outs = []
    for t in range(t_dec):                                        # static unroll
        h = gru_gates(gi, gh, h)
        if t + 1 < t_dec:
            big = jnp.dot(h, w_dec_ref[...], preferred_element_type=f32)   # (B, 2G+IP)
            out = inp + big[:, 2 * G:2 * G + IP] + b_fc
            gh = big[:, :G]                                       # next step's h @ W_h
            gi = gi + big[:, G:2 * G] + b_fcwi                    # folded re-projection
        else:
            # Last step only needs the fc columns.
            out = inp + jnp.dot(h, w_dec_ref[:, 2 * G:2 * G + IP],
                                preferred_element_type=f32) + b_fc
        outs.append(out)
        inp = out

    # Single unmasked full-tile (t_dec*B, IP) store instead of t_dec partial stores.
    out_ref[...] = jnp.concatenate(outs, axis=0)


# -----------------------------------------------------------------------------
# One-time weight fusion / packing (hoisted out of the per-forward hot path)
# -----------------------------------------------------------------------------
def prepare_fused_params(params):
    f32 = jnp.float32
    I, H = params['w_ir'].shape
    IP = _round_up(I, 128)          # lane-padded input/output feature dim
    G = _round_up(3 * H, 128)       # all three gates packed into one lane tile

    # Packed gate weights: columns [0:H)=r, [H:2H)=z, [2H:3H)=n, rest zero.
    w_i_pk = jnp.pad(jnp.concatenate(
        [params['w_ir'], params['w_iz'], params['w_in']], axis=1).astype(f32),
        ((0, IP - I), (0, G - 3 * H)))                                        # (IP, G)
    w_h_pk = jnp.pad(jnp.concatenate(
        [params['w_hr'], params['w_hz'], params['w_hn']], axis=1).astype(f32),
        ((0, 0), (0, G - 3 * H)))                                             # (H, G)
    # Fused biases: r/z get b_i + b_h pre-summed; b_hn stays separate (inside r*(...)).
    b_i_pk = jnp.pad(jnp.concatenate(
        [params['b_ir'] + params['b_hr'],
         params['b_iz'] + params['b_hz'],
         params['b_in']], axis=1).astype(f32),
        ((0, 0), (0, G - 3 * H)))                                             # (1, G)
    b_hn = params['b_hn'].astype(f32)                                         # (1, H)

    w_fc_p = jnp.pad(params['w_fc'].astype(f32), ((0, 0), (0, IP - I)))       # (H, IP)
    b_fc_p = jnp.pad(params['b_fc'].astype(f32), ((0, 0), (0, IP - I)))       # (1, IP)

    # Decoder feedback fold: re-projection of the fed-back output through W_i.
    hp = jax.lax.Precision.HIGHEST
    w_fcwi = jnp.dot(w_fc_p, w_i_pk, precision=hp)                            # (H, G)
    b_fcwi = jnp.dot(b_fc_p, w_i_pk, precision=hp)                            # (1, G)

    # Single decoder-step weight: [W_h | W_fc@W_i | W_fc].
    w_dec = jnp.concatenate([w_h_pk, w_fcwi, w_fc_p], axis=1)                 # (H, 2G+IP)

    return dict(w_i_pk=w_i_pk, w_h_pk=w_h_pk, w_dec=w_dec,
                b_i_pk=b_i_pk, b_hn=b_hn, b_fc_p=b_fc_p, b_fcwi=b_fcwi)


# -----------------------------------------------------------------------------
# Forward wrapper (jit-able): tiny activation prep + single pallas_call
# -----------------------------------------------------------------------------
def seq2seq_forward(encoder_inputs, decoder_inputs, fused):
    """encoder_inputs: (B, source_seq_len-1, I), decoder_inputs: (B, target_seq_len, I)."""
    f32 = jnp.float32
    B, t_enc, I = encoder_inputs.shape
    t_dec = decoder_inputs.shape[1]
    IP = fused['w_i_pk'].shape[0]
    G = fused['w_i_pk'].shape[1]
    H = fused['w_h_pk'].shape[0]
    S = _round_up(B, 8)            # rows per step -> group-aligned per-step gi slices

    # Time-major encoder steps + decoder step 0, padded to (S rows/step, IP lanes).
    enc = jnp.transpose(encoder_inputs, (1, 0, 2)).astype(f32)                # (t_enc, B, I)
    dec0 = decoder_inputs[:, :1, :].astype(f32).transpose(1, 0, 2)            # (1, B, I)
    xin = jnp.concatenate([enc, dec0], axis=0)                                # (t_enc+1, B, I)
    xin = jnp.pad(xin, ((0, 0), (0, S - B), (0, IP - I)))
    xin = xin.reshape((t_enc + 1) * S, IP)

    kernel = functools.partial(seq2seq_kernel, t_enc=t_enc, t_dec=t_dec,
                               batch=B, hidden=H, rows_per_step=S)

    # Everything fits in VMEM (< 1 MiB); single invocation, no grid.
    # TODO(synk): single-TensorCore on purpose — sharding B=2 across v7x's two TCs would
    #   not shorten the 11-step serial chain and duplicates weight DMA.
    vmem = pl.BlockSpec(memory_space=pltpu.MemorySpace.VMEM)
    out = pl.pallas_call(
        kernel,
        out_shape=jax.ShapeDtypeStruct((t_dec * B, IP), f32),
        in_specs=[vmem] * 8,
        out_specs=vmem,
    )(xin, fused['w_i_pk'], fused['w_h_pk'], fused['w_dec'],
      fused['b_i_pk'], fused['b_hn'], fused['b_fc_p'], fused['b_fcwi'])

    out = out.reshape(t_dec, B, IP)[:, :, :I]                                 # (t_dec, B, I)
    return jnp.transpose(out, (1, 0, 2))                                      # (B, t_dec, I)


# -----------------------------------------------------------------------------
# Pure-JAX reference (original, unfused per-gate math) for validation
# -----------------------------------------------------------------------------
def _gru_step_ref(x, h, p):
    r = jax.nn.sigmoid(x @ p['w_ir'] + p['b_ir'] + h @ p['w_hr'] + p['b_hr'])
    z = jax.nn.sigmoid(x @ p['w_iz'] + p['b_iz'] + h @ p['w_hz'] + p['b_hz'])
    n = jnp.tanh(x @ p['w_in'] + p['b_in'] + r * (h @ p['w_hn'] + p['b_hn']))
    return (1.0 - z) * n + z * h


def seq2seq_ref(encoder_inputs, decoder_inputs, params):
    enc = jnp.transpose(encoder_inputs, (1, 0, 2))
    dec = jnp.transpose(decoder_inputs, (1, 0, 2))
    batch = enc.shape[1]
    hidden = params['w_hr'].shape[0]

    state = jnp.zeros((batch, hidden), jnp.float32)
    for i in range(enc.shape[0]):
        state = _gru_step_ref(enc[i], state, params)

    outs, prev = [], None
    for i in range(dec.shape[0]):
        inp = dec[i] if prev is None else prev
        state = _gru_step_ref(inp, state, params)
        out = inp + state @ params['w_fc'] + params['b_fc']
        outs.append(out)
        prev = out
    return jnp.transpose(jnp.stack(outs, axis=0), (1, 0, 2))


if __name__ == "__main__":
    # Module hyper-params (small, consistent with Seq2SeqModel.__init__)
    HUMAN_SIZE = 54
    NUMBER_OF_ACTIONS = 1
    ONE_HOT = True
    INPUT_SIZE = HUMAN_SIZE + NUMBER_OF_ACTIONS if ONE_HOT else HUMAN_SIZE   # 55
    SOURCE_SEQ_LEN = 8
    TARGET_SEQ_LEN = 4
    RNN_SIZE = 32
    BATCH = 2

    key = jax.random.PRNGKey(0)
    keys = jax.random.split(key, 18)
    bound = 1.0 / (RNN_SIZE ** 0.5)

    def u(k, shape):
        return jax.random.uniform(k, shape, jnp.float32, -bound, bound)

    # GRUCell weights stored pre-transposed for x @ W / h @ W; biases kept 2D (1, H).
    params = {
        'w_ir': u(keys[0], (INPUT_SIZE, RNN_SIZE)),
        'w_iz': u(keys[1], (INPUT_SIZE, RNN_SIZE)),
        'w_in': u(keys[2], (INPUT_SIZE, RNN_SIZE)),
        'w_hr': u(keys[3], (RNN_SIZE, RNN_SIZE)),
        'w_hz': u(keys[4], (RNN_SIZE, RNN_SIZE)),
        'w_hn': u(keys[5], (RNN_SIZE, RNN_SIZE)),
        'b_ir': u(keys[6], (1, RNN_SIZE)),
        'b_iz': u(keys[7], (1, RNN_SIZE)),
        'b_in': u(keys[8], (1, RNN_SIZE)),
        'b_hr': u(keys[9], (1, RNN_SIZE)),
        'b_hz': u(keys[10], (1, RNN_SIZE)),
        'b_hn': u(keys[11], (1, RNN_SIZE)),
        'w_fc': u(keys[12], (RNN_SIZE, INPUT_SIZE)),   # fc1: Linear(rnn_size, input_size)
        'b_fc': u(keys[13], (1, INPUT_SIZE)),
    }

    # Encoder loop in the module runs source_seq_len - 1 steps.
    encoder_inputs = jax.random.normal(
        keys[16], (BATCH, SOURCE_SEQ_LEN - 1, INPUT_SIZE), jnp.float32)
    decoder_inputs = jax.random.normal(
        keys[17], (BATCH, TARGET_SEQ_LEN, INPUT_SIZE), jnp.float32)

    # Weight fusion/packing done ONCE per parameter set (not in the per-call hot path).
    fused = jax.tree_util.tree_map(jax.block_until_ready, prepare_fused_params(params))
    fwd = jax.jit(seq2seq_forward)

    out = jax.block_until_ready(fwd(encoder_inputs, decoder_inputs, fused))
    ref = seq2seq_ref(encoder_inputs, decoder_inputs, params)

    assert out.shape == (BATCH, TARGET_SEQ_LEN, INPUT_SIZE), out.shape
    assert jnp.allclose(out, ref, atol=1e-4, rtol=1e-4), "mismatch vs pure-JAX reference"
    print("KERNEL_OK")
</pallas_src>

<mosaic_0001>
module attributes {stable_mosaic.version = 11 : i64} {
  func.func @seq2seq_kernel(%arg0: memref<64x128xf32, #tpu.memory_space<vmem>>, %arg1: memref<128x128xf32, #tpu.memory_space<vmem>>, %arg2: memref<32x128xf32, #tpu.memory_space<vmem>>, %arg3: memref<32x384xf32, #tpu.memory_space<vmem>>, %arg4: memref<1x128xf32, #tpu.memory_space<vmem>>, %arg5: memref<1x32xf32, #tpu.memory_space<vmem>>, %arg6: memref<1x128xf32, #tpu.memory_space<vmem>>, %arg7: memref<1x128xf32, #tpu.memory_space<vmem>>, %arg8: memref<8x128xf32, #tpu.memory_space<vmem>>) attributes {dimension_semantics = [], scalar_prefetch = 0 : i64, scratch_operands = 0 : i64, tpu.core_type = #tpu.core_type<tc>} {
    %c0 = arith.constant 0 : index
    %c0_0 = arith.constant 0 : index
    %0 = vector.load %arg0[%c0, %c0_0] : memref<64x128xf32, #tpu.memory_space<vmem>>, vector<64x128xf32>
    %c0_1 = arith.constant 0 : index
    %c0_2 = arith.constant 0 : index
    %1 = vector.load %arg1[%c0_1, %c0_2] : memref<128x128xf32, #tpu.memory_space<vmem>>, vector<128x128xf32>
    %cst = arith.constant dense<0.000000e+00> : vector<64x128xf32>
    %2 = tpu.matmul %0, %1, %cst {dimension_numbers = #tpu.dot_dimension_numbers<[1], [0], [0], [1], [0, 0, 1, 1], [], []>} : vector<64x128xf32>, vector<128x128xf32>, vector<64x128xf32> -> vector<64x128xf32>
    %c0_3 = arith.constant 0 : index
    %c0_4 = arith.constant 0 : index
    %3 = vector.load %arg4[%c0_3, %c0_4] : memref<1x128xf32, #tpu.memory_space<vmem>>, vector<1x128xf32>
    %4 = vector.broadcast %3 : vector<1x128xf32> to vector<64x128xf32>
    %5 = arith.addf %2, %4 : vector<64x128xf32>
    %c0_5 = arith.constant 0 : index
    %c0_6 = arith.constant 0 : index
    %6 = vector.load %arg5[%c0_5, %c0_6] : memref<1x32xf32, #tpu.memory_space<vmem>>, vector<1x32xf32>
    %7 = vector.shape_cast %6 : vector<1x32xf32> to vector<1x32xf32>
    %8 = vector.broadcast %7 : vector<1x32xf32> to vector<2x32xf32>
    %c0_7 = arith.constant 0 : index
    %c0_8 = arith.constant 0 : index
    %9 = vector.load %arg6[%c0_7, %c0_8] : memref<1x128xf32, #tpu.memory_space<vmem>>, vector<1x128xf32>
    %10 = vector.shape_cast %9 : vector<1x128xf32> to vector<1x128xf32>
    %11 = vector.broadcast %10 : vector<1x128xf32> to vector<2x128xf32>
    %c0_9 = arith.constant 0 : index
    %c0_10 = arith.constant 0 : index
    %12 = vector.load %arg7[%c0_9, %c0_10] : memref<1x128xf32, #tpu.memory_space<vmem>>, vector<1x128xf32>
    %13 = vector.shape_cast %12 : vector<1x128xf32> to vector<1x128xf32>
    %14 = vector.broadcast %13 : vector<1x128xf32> to vector<2x128xf32>
    %cst_11 = arith.constant 0.000000e+00 : f32
    %15 = vector.broadcast %cst_11 : f32 to vector<2x32xf32>
    %16 = vector.extract_strided_slice %5 {offsets = [0, 0], sizes = [2, 128], strides = [1, 1]} : vector<64x128xf32> to vector<2x128xf32>
    %c0_12 = arith.constant 0 : index
    %c0_13 = arith.constant 0 : index
    %17 = vector.load %arg2[%c0_12, %c0_13] : memref<32x128xf32, #tpu.memory_space<vmem>>, vector<32x128xf32>
    %cst_14 = arith.constant dense<0.000000e+00> : vector<2x128xf32>
    %18 = tpu.matmul %15, %17, %cst_14 {dimension_numbers = #tpu.dot_dimension_numbers<[1], [0], [0], [1], [0, 0, 1, 1], [], []>} : vector<2x32xf32>, vector<32x128xf32>, vector<2x128xf32> -> vector<2x128xf32>
    %19 = vector.extract_strided_slice %16 {offsets = [0, 0], sizes = [2, 64], strides = [1, 1]} : vector<2x128xf32> to vector<2x64xf32>
    %20 = vector.extract_strided_slice %18 {offsets = [0, 0], sizes = [2, 64], strides = [1, 1]} : vector<2x128xf32> to vector<2x64xf32>
    %21 = arith.addf %19, %20 : vector<2x64xf32>
    %22 = arith.negf %21 : vector<2x64xf32>
    %23 = math.exp %22 : vector<2x64xf32>
    %cst_15 = arith.constant 1.000000e+00 : f32
    %24 = vector.broadcast %cst_15 : f32 to vector<2x64xf32>
    %25 = arith.addf %24, %23 : vector<2x64xf32>
    %26 = arith.divf %24, %25 : vector<2x64xf32>
    %27 = vector.extract_strided_slice %26 {offsets = [0, 0], sizes = [2, 32], strides = [1, 1]} : vector<2x64xf32> to vector<2x32xf32>
    %28 = vector.extract_strided_slice %26 {offsets = [0, 32], sizes = [2, 32], strides = [1, 1]} : vector<2x64xf32> to vector<2x32xf32>
    %29 = vector.extract_strided_slice %16 {offsets = [0, 64], sizes = [2, 32], strides = [1, 1]} : vector<2x128xf32> to vector<2x32xf32>
    %30 = vector.extract_strided_slice %18 {offsets = [0, 64], sizes = [2, 32], strides = [1, 1]} : vector<2x128xf32> to vector<2x32xf32>
    %31 = arith.addf %30, %8 : vector<2x32xf32>
    %32 = arith.mulf %27, %31 : vector<2x32xf32>
    %33 = arith.addf %29, %32 : vector<2x32xf32>
    %34 = math.tanh %33 : vector<2x32xf32>
    %cst_16 = arith.constant 1.000000e+00 : f32
    %35 = vector.broadcast %cst_16 : f32 to vector<2x32xf32>
    %36 = arith.subf %35, %28 : vector<2x32xf32>
    %37 = arith.mulf %36, %34 : vector<2x32xf32>
    %38 = arith.mulf %28, %15 : vector<2x32xf32>
    %39 = arith.addf %37, %38 : vector<2x32xf32>
    %40 = vector.extract_strided_slice %5 {offsets = [8, 0], sizes = [2, 128], strides = [1, 1]} : vector<64x128xf32> to vector<2x128xf32>
    %c0_17 = arith.constant 0 : index
    %c0_18 = arith.constant 0 : index
    %41 = vector.load %arg2[%c0_17, %c0_18] : memref<32x128xf32, #tpu.memory_space<vmem>>, vector<32x128xf32>
    %cst_19 = arith.constant dense<0.000000e+00> : vector<2x128xf32>
    %42 = tpu.matmul %39, %41, %cst_19 {dimension_numbers = #tpu.dot_dimension_numbers<[1], [0], [0], [1], [0, 0, 1, 1], [], []>} : vector<2x32xf32>, vector<32x128xf32>, vector<2x128xf32> -> vector<2x128xf32>
    %43 = vector.extract_strided_slice %40 {offsets = [0, 0], sizes = [2, 64], strides = [1, 1]} : vector<2x128xf32> to vector<2x64xf32>
    %44 = vector.extract_strided_slice %42 {offsets = [0, 0], sizes = [2, 64], strides = [1, 1]} : vector<2x128xf32> to vector<2x64xf32>
    %45 = arith.addf %43, %44 : vector<2x64xf32>
    %46 = arith.negf %45 : vector<2x64xf32>
    %47 = math.exp %46 : vector<2x64xf32>
    %cst_20 = arith.constant 1.000000e+00 : f32
    %48 = vector.broadcast %cst_20 : f32 to vector<2x64xf32>
    %49 = arith.addf %48, %47 : vector<2x64xf32>
    %50 = arith.divf %48, %49 : vector<2x64xf32>
    %51 = vector.extract_strided_slice %50 {offsets = [0, 0], sizes = [2, 32], strides = [1, 1]} : vector<2x64xf32> to vector<2x32xf32>
    %52 = vector.extract_strided_slice %50 {offsets = [0, 32], sizes = [2, 32], strides = [1, 1]} : vector<2x64xf32> to vector<2x32xf32>
    %53 = vector.extract_strided_slice %40 {offsets = [0, 64], sizes = [2, 32], strides = [1, 1]} : vector<2x128xf32> to vector<2x32xf32>
    %54 = vector.extract_strided_slice %42 {offsets = [0, 64], sizes = [2, 32], strides = [1, 1]} : vector<2x128xf32> to vector<2x32xf32>
    %55 = arith.addf %54, %8 : vector<2x32xf32>
    %56 = arith.mulf %51, %55 : vector<2x32xf32>
    %57 = arith.addf %53, %56 : vector<2x32xf32>
    %58 = math.tanh %57 : vector<2x32xf32>
    %cst_21 = arith.constant 1.000000e+00 : f32
    %59 = vector.broadcast %cst_21 : f32 to vector<2x32xf32>
    %60 = arith.subf %59, %52 : vector<2x32xf32>
    %61 = arith.mulf %60, %58 : vector<2x32xf32>
    %62 = arith.mulf %52, %39 : vector<2x32xf32>
    %63 = arith.addf %61, %62 : vector<2x32xf32>
    %64 = vector.extract_strided_slice %5 {offsets = [16, 0], sizes = [2, 128], strides = [1, 1]} : vector<64x128xf32> to vector<2x128xf32>
    %c0_22 = arith.constant 0 : index
    %c0_23 = arith.constant 0 : index
    %65 = vector.load %arg2[%c0_22, %c0_23] : memref<32x128xf32, #tpu.memory_space<vmem>>, vector<32x128xf32>
    %cst_24 = arith.constant dense<0.000000e+00> : vector<2x128xf32>
    %66 = tpu.matmul %63, %65, %cst_24 {dimension_numbers = #tpu.dot_dimension_numbers<[1], [0], [0], [1], [0, 0, 1, 1], [], []>} : vector<2x32xf32>, vector<32x128xf32>, vector<2x128xf32> -> vector<2x128xf32>
    %67 = vector.extract_strided_slice %64 {offsets = [0, 0], sizes = [2, 64], strides = [1, 1]} : vector<2x128xf32> to vector<2x64xf32>
    %68 = vector.extract_strided_slice %66 {offsets = [0, 0], sizes = [2, 64], strides = [1, 1]} : vector<2x128xf32> to vector<2x64xf32>
    %69 = arith.addf %67, %68 : vector<2x64xf32>
    %70 = arith.negf %69 : vector<2x64xf32>
    %71 = math.exp %70 : vector<2x64xf32>
    %cst_25 = arith.constant 1.000000e+00 : f32
    %72 = vector.broadcast %cst_25 : f32 to vector<2x64xf32>
    %73 = arith.addf %72, %71 : vector<2x64xf32>
    %74 = arith.divf %72, %73 : vector<2x64xf32>
    %75 = vector.extract_strided_slice %74 {offsets = [0, 0], sizes = [2, 32], strides = [1, 1]} : vector<2x64xf32> to vector<2x32xf32>
    %76 = vector.extract_strided_slice %74 {offsets = [0, 32], sizes = [2, 32], strides = [1, 1]} : vector<2x64xf32> to vector<2x32xf32>
    %77 = vector.extract_strided_slice %64 {offsets = [0, 64], sizes = [2, 32], strides = [1, 1]} : vector<2x128xf32> to vector<2x32xf32>
    %78 = vector.extract_strided_slice %66 {offsets = [0, 64], sizes = [2, 32], strides = [1, 1]} : vector<2x128xf32> to vector<2x32xf32>
    %79 = arith.addf %78, %8 : vector<2x32xf32>
    %80 = arith.mulf %75, %79 : vector<2x32xf32>
    %81 = arith.addf %77, %80 : vector<2x32xf32>
    %82 = math.tanh %81 : vector<2x32xf32>
    %cst_26 = arith.constant 1.000000e+00 : f32
    %83 = vector.broadcast %cst_26 : f32 to vector<2x32xf32>
    %84 = arith.subf %83, %76 : vector<2x32xf32>
    %85 = arith.mulf %84, %82 : vector<2x32xf32>
    %86 = arith.mulf %76, %63 : vector<2x32xf32>
    %87 = arith.addf %85, %86 : vector<2x32xf32>
    %88 = vector.extract_strided_slice %5 {offsets = [24, 0], sizes = [2, 128], strides = [1, 1]} : vector<64x128xf32> to vector<2x128xf32>
    %c0_27 = arith.constant 0 : index
    %c0_28 = arith.constant 0 : index
    %89 = vector.load %arg2[%c0_27, %c0_28] : memref<32x128xf32, #tpu.memory_space<vmem>>, vector<32x128xf32>
    %cst_29 = arith.constant dense<0.000000e+00> : vector<2x128xf32>
    %90 = tpu.matmul %87, %89, %cst_29 {dimension_numbers = #tpu.dot_dimension_numbers<[1], [0], [0], [1], [0, 0, 1, 1], [], []>} : vector<2x32xf32>, vector<32x128xf32>, vector<2x128xf32> -> vector<2x128xf32>
    %91 = vector.extract_strided_slice %88 {offsets = [0, 0], sizes = [2, 64], strides = [1, 1]} : vector<2x128xf32> to vector<2x64xf32>
    %92 = vector.extract_strided_slice %90 {offsets = [0, 0], sizes = [2, 64], strides = [1, 1]} : vector<2x128xf32> to vector<2x64xf32>
    %93 = arith.addf %91, %92 : vector<2x64xf32>
    %94 = arith.negf %93 : vector<2x64xf32>
    %95 = math.exp %94 : vector<2x64xf32>
    %cst_30 = arith.constant 1.000000e+00 : f32
    %96 = vector.broadcast %cst_30 : f32 to vector<2x64xf32>
    %97 = arith.addf %96, %95 : vector<2x64xf32>
    %98 = arith.divf %96, %97 : vector<2x64xf32>
    %99 = vector.extract_strided_slice %98 {offsets = [0, 0], sizes = [2, 32], strides = [1, 1]} : vector<2x64xf32> to vector<2x32xf32>
    %100 = vector.extract_strided_slice %98 {offsets = [0, 32], sizes = [2, 32], strides = [1, 1]} : vector<2x64xf32> to vector<2x32xf32>
    %101 = vector.extract_strided_slice %88 {offsets = [0, 64], sizes = [2, 32], strides = [1, 1]} : vector<2x128xf32> to vector<2x32xf32>
    %102 = vector.extract_strided_slice %90 {offsets = [0, 64], sizes = [2, 32], strides = [1, 1]} : vector<2x128xf32> to vector<2x32xf32>
    %103 = arith.addf %102, %8 : vector<2x32xf32>
    %104 = arith.mulf %99, %103 : vector<2x32xf32>
    %105 = arith.addf %101, %104 : vector<2x32xf32>
    %106 = math.tanh %105 : vector<2x32xf32>
    %cst_31 = arith.constant 1.000000e+00 : f32
    %107 = vector.broadcast %cst_31 : f32 to vector<2x32xf32>
    %108 = arith.subf %107, %100 : vector<2x32xf32>
    %109 = arith.mulf %108, %106 : vector<2x32xf32>
    %110 = arith.mulf %100, %87 : vector<2x32xf32>
    %111 = arith.addf %109, %110 : vector<2x32xf32>
    %112 = vector.extract_strided_slice %5 {offsets = [32, 0], sizes = [2, 128], strides = [1, 1]} : vector<64x128xf32> to vector<2x128xf32>
    %c0_32 = arith.constant 0 : index
    %c0_33 = arith.constant 0 : index
    %113 = vector.load %arg2[%c0_32, %c0_33] : memref<32x128xf32, #tpu.memory_space<vmem>>, vector<32x128xf32>
    %cst_34 = arith.constant dense<0.000000e+00> : vector<2x128xf32>
    %114 = tpu.matmul %111, %113, %cst_34 {dimension_numbers = #tpu.dot_dimension_numbers<[1], [0], [0], [1], [0, 0, 1, 1], [], []>} : vector<2x32xf32>, vector<32x128xf32>, vector<2x128xf32> -> vector<2x128xf32>
    %115 = vector.extract_strided_slice %112 {offsets = [0, 0], sizes = [2, 64], strides = [1, 1]} : vector<2x128xf32> to vector<2x64xf32>
    %116 = vector.extract_strided_slice %114 {offsets = [0, 0], sizes = [2, 64], strides = [1, 1]} : vector<2x128xf32> to vector<2x64xf32>
    %117 = arith.addf %115, %116 : vector<2x64xf32>
    %118 = arith.negf %117 : vector<2x64xf32>
    %119 = math.exp %118 : vector<2x64xf32>
    %cst_35 = arith.constant 1.000000e+00 : f32
    %120 = vector.broadcast %cst_35 : f32 to vector<2x64xf32>
    %121 = arith.addf %120, %119 : vector<2x64xf32>
    %122 = arith.divf %120, %121 : vector<2x64xf32>
    %123 = vector.extract_strided_slice %122 {offsets = [0, 0], sizes = [2, 32], strides = [1, 1]} : vector<2x64xf32> to vector<2x32xf32>
    %124 = vector.extract_strided_slice %122 {offsets = [0, 32], sizes = [2, 32], strides = [1, 1]} : vector<2x64xf32> to vector<2x32xf32>
    %125 = vector.extract_strided_slice %112 {offsets = [0, 64], sizes = [2, 32], strides = [1, 1]} : vector<2x128xf32> to vector<2x32xf32>
    %126 = vector.extract_strided_slice %114 {offsets = [0, 64], sizes = [2, 32], strides = [1, 1]} : vector<2x128xf32> to vector<2x32xf32>
    %127 = arith.addf %126, %8 : vector<2x32xf32>
    %128 = arith.mulf %123, %127 : vector<2x32xf32>
    %129 = arith.addf %125, %128 : vector<2x32xf32>
    %130 = math.tanh %129 : vector<2x32xf32>
    %cst_36 = arith.constant 1.000000e+00 : f32
    %131 = vector.broadcast %cst_36 : f32 to vector<2x32xf32>
    %132 = arith.subf %131, %124 : vector<2x32xf32>
    %133 = arith.mulf %132, %130 : vector<2x32xf32>
    %134 = arith.mulf %124, %111 : vector<2x32xf32>
    %135 = arith.addf %133, %134 : vector<2x32xf32>
    %136 = vector.extract_strided_slice %5 {offsets = [40, 0], sizes = [2, 128], strides = [1, 1]} : vector<64x128xf32> to vector<2x128xf32>
    %c0_37 = arith.constant 0 : index
    %c0_38 = arith.constant 0 : index
    %137 = vector.load %arg2[%c0_37, %c0_38] : memref<32x128xf32, #tpu.memory_space<vmem>>, vector<32x128xf32>
    %cst_39 = arith.constant dense<0.000000e+00> : vector<2x128xf32>
    %138 = tpu.matmul %135, %137, %cst_39 {dimension_numbers = #tpu.dot_dimension_numbers<[1], [0], [0], [1], [0, 0, 1, 1], [], []>} : vector<2x32xf32>, vector<32x128xf32>, vector<2x128xf32> -> vector<2x128xf32>
    %139 = vector.extract_strided_slice %136 {offsets = [0, 0], sizes = [2, 64], strides = [1, 1]} : vector<2x128xf32> to vector<2x64xf32>
    %140 = vector.extract_strided_slice %138 {offsets = [0, 0], sizes = [2, 64], strides = [1, 1]} : vector<2x128xf32> to vector<2x64xf32>
    %141 = arith.addf %139, %140 : vector<2x64xf32>
    %142 = arith.negf %141 : vector<2x64xf32>
    %143 = math.exp %142 : vector<2x64xf32>
    %cst_40 = arith.constant 1.000000e+00 : f32
    %144 = vector.broadcast %cst_40 : f32 to vector<2x64xf32>
    %145 = arith.addf %144, %143 : vector<2x64xf32>
    %146 = arith.divf %144, %145 : vector<2x64xf32>
    %147 = vector.extract_strided_slice %146 {offsets = [0, 0], sizes = [2, 32], strides = [1, 1]} : vector<2x64xf32> to vector<2x32xf32>
    %148 = vector.extract_strided_slice %146 {offsets = [0, 32], sizes = [2, 32], strides = [1, 1]} : vector<2x64xf32> to vector<2x32xf32>
    %149 = vector.extract_strided_slice %136 {offsets = [0, 64], sizes = [2, 32], strides = [1, 1]} : vector<2x128xf32> to vector<2x32xf32>
    %150 = vector.extract_strided_slice %138 {offsets = [0, 64], sizes = [2, 32], strides = [1, 1]} : vector<2x128xf32> to vector<2x32xf32>
    %151 = arith.addf %150, %8 : vector<2x32xf32>
    %152 = arith.mulf %147, %151 : vector<2x32xf32>
    %153 = arith.addf %149, %152 : vector<2x32xf32>
    %154 = math.tanh %153 : vector<2x32xf32>
    %cst_41 = arith.constant 1.000000e+00 : f32
    %155 = vector.broadcast %cst_41 : f32 to vector<2x32xf32>
    %156 = arith.subf %155, %148 : vector<2x32xf32>
    %157 = arith.mulf %156, %154 : vector<2x32xf32>
    %158 = arith.mulf %148, %135 : vector<2x32xf32>
    %159 = arith.addf %157, %158 : vector<2x32xf32>
    %160 = vector.extract_strided_slice %5 {offsets = [48, 0], sizes = [2, 128], strides = [1, 1]} : vector<64x128xf32> to vector<2x128xf32>
    %c0_42 = arith.constant 0 : index
    %c0_43 = arith.constant 0 : index
    %161 = vector.load %arg2[%c0_42, %c0_43] : memref<32x128xf32, #tpu.memory_space<vmem>>, vector<32x128xf32>
    %cst_44 = arith.constant dense<0.000000e+00> : vector<2x128xf32>
    %162 = tpu.matmul %159, %161, %cst_44 {dimension_numbers = #tpu.dot_dimension_numbers<[1], [0], [0], [1], [0, 0, 1, 1], [], []>} : vector<2x32xf32>, vector<32x128xf32>, vector<2x128xf32> -> vector<2x128xf32>
    %163 = vector.extract_strided_slice %160 {offsets = [0, 0], sizes = [2, 64], strides = [1, 1]} : vector<2x128xf32> to vector<2x64xf32>
    %164 = vector.extract_strided_slice %162 {offsets = [0, 0], sizes = [2, 64], strides = [1, 1]} : vector<2x128xf32> to vector<2x64xf32>
    %165 = arith.addf %163, %164 : vector<2x64xf32>
    %166 = arith.negf %165 : vector<2x64xf32>
    %167 = math.exp %166 : vector<2x64xf32>
    %cst_45 = arith.constant 1.000000e+00 : f32
    %168 = vector.broadcast %cst_45 : f32 to vector<2x64xf32>
    %169 = arith.addf %168, %167 : vector<2x64xf32>
    %170 = arith.divf %168, %169 : vector<2x64xf32>
    %171 = vector.extract_strided_slice %170 {offsets = [0, 0], sizes = [2, 32], strides = [1, 1]} : vector<2x64xf32> to vector<2x32xf32>
    %172 = vector.extract_strided_slice %170 {offsets = [0, 32], sizes = [2, 32], strides = [1, 1]} : vector<2x64xf32> to vector<2x32xf32>
    %173 = vector.extract_strided_slice %160 {offsets = [0, 64], sizes = [2, 32], strides = [1, 1]} : vector<2x128xf32> to vector<2x32xf32>
    %174 = vector.extract_strided_slice %162 {offsets = [0, 64], sizes = [2, 32], strides = [1, 1]} : vector<2x128xf32> to vector<2x32xf32>
    %175 = arith.addf %174, %8 : vector<2x32xf32>
    %176 = arith.mulf %171, %175 : vector<2x32xf32>
    %177 = arith.addf %173, %176 : vector<2x32xf32>
    %178 = math.tanh %177 : vector<2x32xf32>
    %cst_46 = arith.constant 1.000000e+00 : f32
    %179 = vector.broadcast %cst_46 : f32 to vector<2x32xf32>
    %180 = arith.subf %179, %172 : vector<2x32xf32>
    %181 = arith.mulf %180, %178 : vector<2x32xf32>
    %182 = arith.mulf %172, %159 : vector<2x32xf32>
    %183 = arith.addf %181, %182 : vector<2x32xf32>
    %c56 = arith.constant 56 : index
    %c0_47 = arith.constant 0 : index
    %184 = vector.load %arg0[%c56, %c0_47] : memref<64x128xf32, #tpu.memory_space<vmem>>, vector<2x128xf32>
    %185 = vector.extract_strided_slice %5 {offsets = [56, 0], sizes = [2, 128], strides = [1, 1]} : vector<64x128xf32> to vector<2x128xf32>
    %c0_48 = arith.constant 0 : index
    %c0_49 = arith.constant 0 : index
    %186 = vector.load %arg2[%c0_48, %c0_49] : memref<32x128xf32, #tpu.memory_space<vmem>>, vector<32x128xf32>
    %cst_50 = arith.constant dense<0.000000e+00> : vector<2x128xf32>
    %187 = tpu.matmul %183, %186, %cst_50 {dimension_numbers = #tpu.dot_dimension_numbers<[1], [0], [0], [1], [0, 0, 1, 1], [], []>} : vector<2x32xf32>, vector<32x128xf32>, vector<2x128xf32> -> vector<2x128xf32>
    %188 = vector.extract_strided_slice %185 {offsets = [0, 0], sizes = [2, 64], strides = [1, 1]} : vector<2x128xf32> to vector<2x64xf32>
    %189 = vector.extract_strided_slice %187 {offsets = [0, 0], sizes = [2, 64], strides = [1, 1]} : vector<2x128xf32> to vector<2x64xf32>
    %190 = arith.addf %188, %189 : vector<2x64xf32>
    %191 = arith.negf %190 : vector<2x64xf32>
    %192 = math.exp %191 : vector<2x64xf32>
    %cst_51 = arith.constant 1.000000e+00 : f32
    %193 = vector.broadcast %cst_51 : f32 to vector<2x64xf32>
    %194 = arith.addf %193, %192 : vector<2x64xf32>
    %195 = arith.divf %193, %194 : vector<2x64xf32>
    %196 = vector.extract_strided_slice %195 {offsets = [0, 0], sizes = [2, 32], strides = [1, 1]} : vector<2x64xf32> to vector<2x32xf32>
    %197 = vector.extract_strided_slice %195 {offsets = [0, 32], sizes = [2, 32], strides = [1, 1]} : vector<2x64xf32> to vector<2x32xf32>
    %198 = vector.extract_strided_slice %185 {offsets = [0, 64], sizes = [2, 32], strides = [1, 1]} : vector<2x128xf32> to vector<2x32xf32>
    %199 = vector.extract_strided_slice %187 {offsets = [0, 64], sizes = [2, 32], strides = [1, 1]} : vector<2x128xf32> to vector<2x32xf32>
    %200 = arith.addf %199, %8 : vector<2x32xf32>
    %201 = arith.mulf %196, %200 : vector<2x32xf32>
    %202 = arith.addf %198, %201 : vector<2x32xf32>
    %203 = math.tanh %202 : vector<2x32xf32>
    %cst_52 = arith.constant 1.000000e+00 : f32
    %204 = vector.broadcast %cst_52 : f32 to vector<2x32xf32>
    %205 = arith.subf %204, %197 : vector<2x32xf32>
    %206 = arith.mulf %205, %203 : vector<2x32xf32>
    %207 = arith.mulf %197, %183 : vector<2x32xf32>
    %208 = arith.addf %206, %207 : vector<2x32xf32>
    %c0_53 = arith.constant 0 : index
    %c0_54 = arith.constant 0 : index
    %209 = vector.load %arg3[%c0_53, %c0_54] : memref<32x384xf32, #tpu.memory_space<vmem>>, vector<32x384xf32>
    %cst_55 = arith.constant dense<0.000000e+00> : vector<2x384xf32>
    %210 = tpu.matmul %208, %209, %cst_55 {dimension_numbers = #tpu.dot_dimension_numbers<[1], [0], [0], [1], [0, 0, 1, 1], [], []>} : vector<2x32xf32>, vector<32x384xf32>, vector<2x384xf32> -> vector<2x384xf32>
    %211 = vector.extract_strided_slice %210 {offsets = [0, 256], sizes = [2, 128], strides = [1, 1]} : vector<2x384xf32> to vector<2x128xf32>
    %212 = arith.addf %184, %211 : vector<2x128xf32>
    %213 = arith.addf %212, %11 : vector<2x128xf32>
    %214 = vector.extract_strided_slice %210 {offsets = [0, 0], sizes = [2, 128], strides = [1, 1]} : vector<2x384xf32> to vector<2x128xf32>
    %215 = vector.extract_strided_slice %210 {offsets = [0, 128], sizes = [2, 128], strides = [1, 1]} : vector<2x384xf32> to vector<2x128xf32>
    %216 = arith.addf %185, %215 : vector<2x128xf32>
    %217 = arith.addf %216, %14 : vector<2x128xf32>
    %218 = vector.extract_strided_slice %217 {offsets = [0, 0], sizes = [2, 64], strides = [1, 1]} : vector<2x128xf32> to vector<2x64xf32>
    %219 = vector.extract_strided_slice %214 {offsets = [0, 0], sizes = [2, 64], strides = [1, 1]} : vector<2x128xf32> to vector<2x64xf32>
    %220 = arith.addf %218, %219 : vector<2x64xf32>
    %221 = arith.negf %220 : vector<2x64xf32>
    %222 = math.exp %221 : vector<2x64xf32>
    %cst_56 = arith.constant 1.000000e+00 : f32
    %223 = vector.broadcast %cst_56 : f32 to vector<2x64xf32>
    %224 = arith.addf %223, %222 : vector<2x64xf32>
    %225 = arith.divf %223, %224 : vector<2x64xf32>
    %226 = vector.extract_strided_slice %225 {offsets = [0, 0], sizes = [2, 32], strides = [1, 1]} : vector<2x64xf32> to vector<2x32xf32>
    %227 = vector.extract_strided_slice %225 {offsets = [0, 32], sizes = [2, 32], strides = [1, 1]} : vector<2x64xf32> to vector<2x32xf32>
    %228 = vector.extract_strided_slice %217 {offsets = [0, 64], sizes = [2, 32], strides = [1, 1]} : vector<2x128xf32> to vector<2x32xf32>
    %229 = vector.extract_strided_slice %214 {offsets = [0, 64], sizes = [2, 32], strides = [1, 1]} : vector<2x128xf32> to vector<2x32xf32>
    %230 = arith.addf %229, %8 : vector<2x32xf32>
    %231 = arith.mulf %226, %230 : vector<2x32xf32>
    %232 = arith.addf %228, %231 : vector<2x32xf32>
    %233 = math.tanh %232 : vector<2x32xf32>
    %cst_57 = arith.constant 1.000000e+00 : f32
    %234 = vector.broadcast %cst_57 : f32 to vector<2x32xf32>
    %235 = arith.subf %234, %227 : vector<2x32xf32>
    %236 = arith.mulf %235, %233 : vector<2x32xf32>
    %237 = arith.mulf %227, %208 : vector<2x32xf32>
    %238 = arith.addf %236, %237 : vector<2x32xf32>
    %c0_58 = arith.constant 0 : index
    %c0_59 = arith.constant 0 : index
    %239 = vector.load %arg3[%c0_58, %c0_59] : memref<32x384xf32, #tpu.memory_space<vmem>>, vector<32x384xf32>
    %cst_60 = arith.constant dense<0.000000e+00> : vector<2x384xf32>
    %240 = tpu.matmul %238, %239, %cst_60 {dimension_numbers = #tpu.dot_dimension_numbers<[1], [0], [0], [1], [0, 0, 1, 1], [], []>} : vector<2x32xf32>, vector<32x384xf32>, vector<2x384xf32> -> vector<2x384xf32>
    %241 = vector.extract_strided_slice %240 {offsets = [0, 256], sizes = [2, 128], strides = [1, 1]} : vector<2x384xf32> to vector<2x128xf32>
    %242 = arith.addf %213, %241 : vector<2x128xf32>
    %243 = arith.addf %242, %11 : vector<2x128xf32>
    %244 = vector.extract_strided_slice %240 {offsets = [0, 0], sizes = [2, 128], strides = [1, 1]} : vector<2x384xf32> to vector<2x128xf32>
    %245 = vector.extract_strided_slice %240 {offsets = [0, 128], sizes = [2, 128], strides = [1, 1]} : vector<2x384xf32> to vector<2x128xf32>
    %246 = arith.addf %217, %245 : vector<2x128xf32>
    %247 = arith.addf %246, %14 : vector<2x128xf32>
    %248 = vector.extract_strided_slice %247 {offsets = [0, 0], sizes = [2, 64], strides = [1, 1]} : vector<2x128xf32> to vector<2x64xf32>
    %249 = vector.extract_strided_slice %244 {offsets = [0, 0], sizes = [2, 64], strides = [1, 1]} : vector<2x128xf32> to vector<2x64xf32>
    %250 = arith.addf %248, %249 : vector<2x64xf32>
    %251 = arith.negf %250 : vector<2x64xf32>
    %252 = math.exp %251 : vector<2x64xf32>
    %cst_61 = arith.constant 1.000000e+00 : f32
    %253 = vector.broadcast %cst_61 : f32 to vector<2x64xf32>
    %254 = arith.addf %253, %252 : vector<2x64xf32>
    %255 = arith.divf %253, %254 : vector<2x64xf32>
    %256 = vector.extract_strided_slice %255 {offsets = [0, 0], sizes = [2, 32], strides = [1, 1]} : vector<2x64xf32> to vector<2x32xf32>
    %257 = vector.extract_strided_slice %255 {offsets = [0, 32], sizes = [2, 32], strides = [1, 1]} : vector<2x64xf32> to vector<2x32xf32>
    %258 = vector.extract_strided_slice %247 {offsets = [0, 64], sizes = [2, 32], strides = [1, 1]} : vector<2x128xf32> to vector<2x32xf32>
    %259 = vector.extract_strided_slice %244 {offsets = [0, 64], sizes = [2, 32], strides = [1, 1]} : vector<2x128xf32> to vector<2x32xf32>
    %260 = arith.addf %259, %8 : vector<2x32xf32>
    %261 = arith.mulf %256, %260 : vector<2x32xf32>
    %262 = arith.addf %258, %261 : vector<2x32xf32>
    %263 = math.tanh %262 : vector<2x32xf32>
    %cst_62 = arith.constant 1.000000e+00 : f32
    %264 = vector.broadcast %cst_62 : f32 to vector<2x32xf32>
    %265 = arith.subf %264, %257 : vector<2x32xf32>
    %266 = arith.mulf %265, %263 : vector<2x32xf32>
    %267 = arith.mulf %257, %238 : vector<2x32xf32>
    %268 = arith.addf %266, %267 : vector<2x32xf32>
    %c0_63 = arith.constant 0 : index
    %c0_64 = arith.constant 0 : index
    %269 = vector.load %arg3[%c0_63, %c0_64] : memref<32x384xf32, #tpu.memory_space<vmem>>, vector<32x384xf32>
    %cst_65 = arith.constant dense<0.000000e+00> : vector<2x384xf32>
    %270 = tpu.matmul %268, %269, %cst_65 {dimension_numbers = #tpu.dot_dimension_numbers<[1], [0], [0], [1], [0, 0, 1, 1], [], []>} : vector<2x32xf32>, vector<32x384xf32>, vector<2x384xf32> -> vector<2x384xf32>
    %271 = vector.extract_strided_slice %270 {offsets = [0, 256], sizes = [2, 128], strides = [1, 1]} : vector<2x384xf32> to vector<2x128xf32>
    %272 = arith.addf %243, %271 : vector<2x128xf32>
    %273 = arith.addf %272, %11 : vector<2x128xf32>
    %274 = vector.extract_strided_slice %270 {offsets = [0, 0], sizes = [2, 128], strides = [1, 1]} : vector<2x384xf32> to vector<2x128xf32>
    %275 = vector.extract_strided_slice %270 {offsets = [0, 128], sizes = [2, 128], strides = [1, 1]} : vector<2x384xf32> to vector<2x128xf32>
    %276 = arith.addf %247, %275 : vector<2x128xf32>
    %277 = arith.addf %276, %14 : vector<2x128xf32>
    %278 = vector.extract_strided_slice %277 {offsets = [0, 0], sizes = [2, 64], strides = [1, 1]} : vector<2x128xf32> to vector<2x64xf32>
    %279 = vector.extract_strided_slice %274 {offsets = [0, 0], sizes = [2, 64], strides = [1, 1]} : vector<2x128xf32> to vector<2x64xf32>
    %280 = arith.addf %278, %279 : vector<2x64xf32>
    %281 = arith.negf %280 : vector<2x64xf32>
    %282 = math.exp %281 : vector<2x64xf32>
    %cst_66 = arith.constant 1.000000e+00 : f32
    %283 = vector.broadcast %cst_66 : f32 to vector<2x64xf32>
    %284 = arith.addf %283, %282 : vector<2x64xf32>
    %285 = arith.divf %283, %284 : vector<2x64xf32>
    %286 = vector.extract_strided_slice %285 {offsets = [0, 0], sizes = [2, 32], strides = [1, 1]} : vector<2x64xf32> to vector<2x32xf32>
    %287 = vector.extract_strided_slice %285 {offsets = [0, 32], sizes = [2, 32], strides = [1, 1]} : vector<2x64xf32> to vector<2x32xf32>
    %288 = vector.extract_strided_slice %277 {offsets = [0, 64], sizes = [2, 32], strides = [1, 1]} : vector<2x128xf32> to vector<2x32xf32>
    %289 = vector.extract_strided_slice %274 {offsets = [0, 64], sizes = [2, 32], strides = [1, 1]} : vector<2x128xf32> to vector<2x32xf32>
    %290 = arith.addf %289, %8 : vector<2x32xf32>
    %291 = arith.mulf %286, %290 : vector<2x32xf32>
    %292 = arith.addf %288, %291 : vector<2x32xf32>
    %293 = math.tanh %292 : vector<2x32xf32>
    %cst_67 = arith.constant 1.000000e+00 : f32
    %294 = vector.broadcast %cst_67 : f32 to vector<2x32xf32>
    %295 = arith.subf %294, %287 : vector<2x32xf32>
    %296 = arith.mulf %295, %293 : vector<2x32xf32>
    %297 = arith.mulf %287, %268 : vector<2x32xf32>
    %298 = arith.addf %296, %297 : vector<2x32xf32>
    %c0_68 = arith.constant 0 : index
    %c256 = arith.constant 256 : index
    %299 = vector.load %arg3[%c0_68, %c256] : memref<32x384xf32, #tpu.memory_space<vmem>>, vector<32x128xf32>
    %cst_69 = arith.constant dense<0.000000e+00> : vector<2x128xf32>
    %300 = tpu.matmul %298, %299, %cst_69 {dimension_numbers = #tpu.dot_dimension_numbers<[1], [0], [0], [1], [0, 0, 1, 1], [], []>} : vector<2x32xf32>, vector<32x128xf32>, vector<2x128xf32> -> vector<2x128xf32>
    %301 = arith.addf %273, %300 : vector<2x128xf32>
    %302 = arith.addf %301, %11 : vector<2x128xf32>
    %303 = tpu.concatenate %213, %243, %273, %302 in 0 : vector<2x128xf32>, vector<2x128xf32>, vector<2x128xf32>, vector<2x128xf32> -> vector<8x128xf32>
    %c0_70 = arith.constant 0 : index
    %c0_71 = arith.constant 0 : index
    %304 = vector.load %arg8[%c0_70, %c0_71] : memref<8x128xf32, #tpu.memory_space<vmem>>, vector<8x128xf32>
    tpu.vector_store %arg8[%c0_70, %c0_71], %303 {strides = array<i32>} : memref<8x128xf32, #tpu.memory_space<vmem>>, vector<8x128xf32>,
    return
  }
}

</mosaic_0001>

<bundles_post_ra>
// kernel: seq2seq_forward.1
= control target key start
LH: loop header
LB: loop body
LE: loop exit
PB: predicated region body
PF: predicated region fallthrough
CT: control target
= control target key end

     0   :  { %13 = vsyncpa [#allocation3], 0  ;;  %s2574_s0 = inlined_call_operand.vmem [shape: f32[64,128], index: 0, kind: input, shape index: {}]   ;;  %s2575_s1 = inlined_call_operand.hbm [shape: f32[128,128], index: 1, kind: input, shape index: {}]   ;;  %s2576_s2 = inlined_call_operand.hbm [shape: f32[32,128], index: 2, kind: input, shape index: {}]   ;;  %s2577_s3 = inlined_call_operand.vmem [shape: f32[32,384], index: 3, kind: input, shape index: {}]   ;;  %s2578_s4 = inlined_call_operand.vmem [shape: f32[1,128], index: 4, kind: input, shape index: {}]   ;;  %s2579_s5 = inlined_call_operand.vmem [shape: f32[1,32], index: 5, kind: input, shape index: {}]   ;;  %s2580_s6 = inlined_call_operand.vmem [shape: f32[1,128], index: 6, kind: input, shape index: {}]   ;;  %s2581_s7 = inlined_call_operand.vmem [shape: f32[1,128], index: 7, kind: input, shape index: {}]   ;;  %s2582_s8 = inlined_call_operand.vmem [shape: f32[8,128], index: 8, kind: output, shape index: {}]  }
   0x1   :  { %14 = vsyncpa [#allocation5], 0  ;;  %s2218_s27 = smov [#allocation2]   ;;  %s2170_s9 = scalar_lea.hbm %s2575_s1, 2048 }
   0x2   :  { %s22_s28 = sshll.u32 %s2218_s27, 4  ;;  %p2171_p0 = scmp.ne.s32.totalorder %s2575_s1, %s2170_s9  ;;  %s23_s28 = int_to_ptr.vmem [resolvable:$true] %s22_s28 }
   0x3   :  { %p2174_p1 = scmp.lt.u32.totalorder %s2170_s9, %s2575_s1 }
   0x5   :  { %p2176_p2 = pnand %p2174_p1, %p2171_p0 }
   0x7   :  { %2179 = shalt.err (!%p2176_p2)
}
   0x8   :  { %s2180_s14 = scalar_lea.vmem %s23_s28, 2048  ;;  %p2185_p4 = scmp.lt.s32.totalorder %s23_s28, %s23_s28 }
   0x9   :  { %p2181_p3 = scmp.ne.s32.totalorder %s23_s28, %s2180_s14  ;;  %p2186_p5 = scmp.lt.s32.totalorder %s2180_s14, %s2180_s14 }
   0xb   :  { %p2187_p6 = por %p2186_p5, %p2185_p4 }
   0xd   :  { %p2188_p7 = pnand %p2187_p6, %p2181_p3 }
   0xf   :  { %2191 = shalt.err (!%p2188_p7)
}
  0x10   :  { %s2219_s15 = smov 128   ;;  %s2220_s16 = smov 8  }
  0x11   :  { %28 = dma.hbm_to_vmem [thread:$0]  %s2575_s1, 2048, %s23_s28, [#allocation3], %s2219_s15, %s2219_s15, %s2220_s16  }
  0x12   :  { %s2221_s19 = smov [#allocation4]   ;;  %s2192_s23 = scalar_lea.hbm %s2576_s2, 512 }
  0x13   :  { %s34_s20 = sshll.u32 %s2221_s19, 4  ;;  %p2193_p8 = scmp.ne.s32.totalorder %s2576_s2, %s2192_s23  ;;  %s35_s20 = int_to_ptr.vmem [resolvable:$true] %s34_s20 }
  0x14   :  { %p2196_p9 = scmp.lt.u32.totalorder %s2192_s23, %s2576_s2 }
  0x16   :  { %p2198_p10 = pnand %p2196_p9, %p2193_p8 }
  0x18   :  { %2201 = shalt.err (!%p2198_p10)
}
  0x19   :  { %s2202_s29 = scalar_lea.vmem %s35_s20, 512  ;;  %p2207_p12 = scmp.lt.s32.totalorder %s35_s20, %s35_s20 }
  0x1a   :  { %p2203_p11 = scmp.ne.s32.totalorder %s35_s20, %s2202_s29  ;;  %p2208_p13 = scmp.lt.s32.totalorder %s2202_s29, %s2202_s29 }
  0x1c   :  { %p2209_p0 = por %p2208_p13, %p2207_p12 }
  0x1e   :  { %p2210_p1 = pnand %p2209_p0, %p2203_p11 }
  0x20   :  { %2213 = shalt.err (!%p2210_p1)
}
  0x21   :  { %40 = dma.hbm_to_vmem [thread:$0]  %s2576_s2, 512, %s35_s20, [#allocation5], %s2219_s15, %s2219_s15, %s2220_s16  }
  0x22   :  { %2214 = dma.done.wait [#allocation3], 2048  }
  0x23   :  { %2215 = vsyncadd [#allocation3], 4294965248 }
  0x24   :  { %2216 = dma.done.wait [#allocation5], 512  }
  0x25   :  { %2217 = vsyncadd [#allocation5], 4294966784  ;;  %v2222_v0 = vmov 0.0|0.0   ;;  %vm2223_vm0 = vmmov 0   ;;  %v2224_v1 = vmov 0.0   ;;  %v65_v2 = vld [vmem:[#allocation2] sm:$0xff] }
  0x26   :  { %1999 = vmatprep.subr.bf16.mxu1 %v2222_v0  ;;  %1843 = vmatprep.mubr.msk.f32.mxu1 %vm2223_vm0, %v2224_v1  ;;  %v66_v3 = vld [vmem:[#allocation2 + $0x8] sm:$0xff]  ;;  %v213_v4 = vld [vmem:[#allocation4] sm:$0xff]  ;;  %v67_v7 = vld [vmem:[#allocation2 + $0x10] sm:$0xff]  ;;  %s2225_s11 = smov 64   ;;  %s2226_s15 = smov 96   ;;  %vm217_vm1 = vcmask 261120  }
  0x27   :  { %v1967_v5 = vpack.c.bf16 %v66_v3, %v65_v2  ;;  %v214_v6 = vld [vmem:[#allocation4 + $0x8] sm:$0xff]  ;;  %v68_v8 = vld [vmem:[#allocation2 + $0x18] sm:$0xff]  ;;  %v215_v11 = vld [vmem:[#allocation4 + $0x10] sm:$0xff]  ;;  %vm1665_vm2 = vcmask 1041408   ;;  %vm1667_vm3 = vcmask 1043456   ;;  %vm1669_vm4 = vcmask 1045504  }
  0x28   :  { %v2299_v9 = vpack.c.bf16 %v214_v6, %v213_v4  ;;  %v1971_v10 = vpack.c.bf16 %v68_v8, %v67_v7  ;;  %v216_v12 = vld [vmem:[#allocation4 + $0x18] sm:$0xff]  ;;  %v69_v13 = vld [vmem:[#allocation2 + $0x20] sm:$0xff]  ;;  %v70_v14 = vld [vmem:[#allocation2 + $0x28] sm:$0xff] }
  0x29   :  { %1968 = vmatprep.subr.bf16.mxu0 %v1967_v5  ;;  %v2302_v15 = vpack.c.bf16 %v216_v12, %v215_v11  ;;  %v1975_v16 = vpack.c.bf16 %v70_v14, %v69_v13  ;;  %v71_v17 = vld [vmem:[#allocation2 + $0x30] sm:$0xff]  ;;  %v72_v18 = vld [vmem:[#allocation2 + $0x38] sm:$0xff]  ;;  %v57_v19 = vld [vmem:[%s2574_s0] sm:$0xff] }
  0x2a   :  { %2001 = vmatpush3.bf16.msra.mxu1 %v2299_v9  ;;  %1970 = vmatpush3.bf16.msra.mxu0 %v1967_v5  ;;  %v1679_v20 = vld [vmem:[%s2579_s5] ss:$0 sm:$0xff]  ;;  %v1979_v21 = vpack.c.bf16 %v72_v18, %v71_v17  ;;  %v74_v23 = vld [vmem:[#allocation2 + $0x48] sm:$0xff]  ;;  %v75_v25 = vld [vmem:[#allocation2 + $0x50] sm:$0xff] }
  0x2b   :  { %2002 = vmatprep.subr.bf16.mxu1 %v2222_v0  ;;  %1972 = vmatprep.subr.bf16.mxu0 %v1971_v10  ;;  %v73_v22 = vld [vmem:[#allocation2 + $0x40] sm:$0xff]  ;;  %v76_v26 = vld [vmem:[#allocation2 + $0x58] sm:$0xff]  ;;  %v78_v29 = vld [vmem:[#allocation2 + $0x68] sm:$0xff] }
  0x2c   :  { %1823 = vmatprep.mubr.f32.mxu0 %v57_v19  ;;  %298 = vrot.lane.b32.xlu0 %v1679_v20, %s2225_s11  ;;  %v1983_v24 = vpack.c.bf16 %v74_v23, %v73_v22  ;;  %v1987_v27 = vpack.c.bf16 %v76_v26, %v75_v25  ;;  %v77_v28 = vld [vmem:[#allocation2 + $0x60] sm:$0xff]  ;;  %v79_v31 = vld [vmem:[#allocation2 + $0x70] sm:$0xff]  ;;  %v80_v32 = vld [vmem:[#allocation2 + $0x78] sm:$0xff] }
  0x2d   :  { %v1991_v30 = vpack.c.bf16 %v78_v29, %v77_v28  ;;  %v1995_v33 = vpack.c.bf16 %v80_v32, %v79_v31  ;;  %v58_v34 = vld [vmem:[%s2574_s0 + $0x8] sm:$0xff]  ;;  %v2336_v41 = vld [vmem:[%s2578_s4] ss:$0 sm:$0xff]  ;;  %v59_v11 = vld [vmem:[%s2574_s0 + $0x10] sm:$0xff] }
  0x2e   :  { %2004 = vmatpush3.bf16.msra.mxu1 %v2302_v15  ;;  %1974 = vmatpush3.bf16.msra.mxu0 %v1971_v10  ;;  %v60_v12 = vld [vmem:[%s2574_s0 + $0x18] sm:$0xff] }
  0x2f   :  { %1976 = vmatprep.subr.bf16.mxu0 %v1975_v16  ;;  %2005 = vmatprep.subr.bf16.mxu1 %v2222_v0 }
  0x31   :  { %1844 = vmatmul.mubr.f32.vlgmr.msra.gmra.mrb[0].mxu1 %v2224_v1 }
  0x32   :  { %1978 = vmatpush3.bf16.msra.mxu0 %v1975_v16  ;;  %2007 = vmatpush3.bf16.msra.mxu1 %v2299_v9 }
  0x33   :  { %1980 = vmatprep.subr.bf16.mxu0 %v1979_v21  ;;  %2008 = vmatprep.subr.bf16.mxu1 %v2222_v0 }
  0x34   :  { %1854 = vmatprep.mubr.msk.f32.mxu1 %vm2223_vm0, %v2224_v1 }
  0x36   :  { %1982 = vmatpush3.bf16.msra.mxu0 %v1979_v21  ;;  %2010 = vmatpush3.bf16.msra.mxu1 %v2302_v15 }
  0x37   :  { %1984 = vmatprep.subr.bf16.mxu0 %v1983_v24  ;;  %2011 = vmatprep.subr.bf16.mxu1 %v2222_v0 }
  0x3a   :  { %1986 = vmatpush3.bf16.msra.mxu0 %v1983_v24 }
  0x3b   :  { %1988 = vmatprep.subr.bf16.mxu0 %v1987_v27 }
  0x3e   :  { %1990 = vmatpush3.bf16.msra.mxu0 %v1987_v27 }
  0x3f   :  { %1992 = vmatprep.subr.bf16.mxu0 %v1991_v30 }
  0x42   :  { %1994 = vmatpush3.bf16.msra.mxu0 %v1991_v30 }
  0x43   :  { %1996 = vmatprep.subr.bf16.mxu0 %v1995_v33 }
  0x46   :  { %1998 = vmatpush3.bf16.msra.mxu0 %v1995_v33 }
  0x47   :  { %2029 = vmatprep.subr.bf16.mxu0 %v2222_v0 }
  0x49   :  { %1824 = vmatmul.mubr.f32.vlgmr.msra.gmra.mrb[0].mxu0 %v58_v34 }
  0x4a   :  { %2031 = vmatpush3.bf16.msra.mxu0 %v2299_v9  ;;  %1826 = vmatprep.mubr.f32.mxu0 %v59_v11 }
  0x4b   :  { %2032 = vmatprep.subr.bf16.mxu0 %v2222_v0 }
  0x4d   :  { %1827 = vmatmul.mubr.f32.gmra.mrb[2].mxu0 %v60_v12 }
  0x4e   :  { %2034 = vmatpush3.bf16.msra.mxu0 %v2302_v15 }
  0x4f   :  { %2041 = vmatprep.subr.bf16.mxu0 %v2222_v0 }
  0x9e   :  { %v2329_v35 = vpop.permute.xlu0 %298 }
 0x104   :  { %v287_v36 = vpop.f32.mrb[0].mxu1 }
 0x105   :  { %v1845_v37 = vpop.f32.mrb[1].mxu1  ;;  %v301_v38 = vadd.f32 %v2329_v35, %v287_v36 }
 0x107   :  { %303 = vrot.lane.b32.xlu0 %v301_v38, %s2225_s11 }
 0x11c   :  { %v1825_v39 = vpop.f32.mrb[0].mxu0 }
 0x11d   :  { %v154_v40 = vpop.f32.mrb[1].mxu0  ;;  %v160_v62 = vadd.f32 %v1825_v39, %v2336_v41 }
 0x11e   :  { %v155_v42 = vadd.f32 %v2336_v41, %v154_v40 }
 0x120   :  { %v291_v43 = vadd.f32 %v287_v36, %v155_v42  ;;  %v1828_v20 = vpop.f32.mrb[2].mxu0 }
 0x121   :  { %v164_v21 = vpop.f32.mrb[3].mxu0 }
 0x122   :  { %v1682_v44 = vmul.f32 -1.442695, %v291_v43  ;;  %v165_v26 = vadd.f32 %v2336_v41, %v164_v21 }
 0x124   :  { %2104 = vpow2.f32 %v1682_v44 }
 0x12e   :  { %v2105_v45 = vpop.eup %2104 }
 0x12f   :  { %v295_v46 = vadd.f32 1.0, %v2105_v45 }
 0x131   :  { %2106 = vrcp.f32 %v295_v46 }
 0x13b   :  { %v2107_v47 = vpop.eup %2106 }
 0x13c   :  { %v313_v53 = vsub.f32 1.0, %v2107_v47  ;;  %v319_v55 = vmul.f32 0.0, %v2107_v47 }
 0x179   :  { %v304_v48 = vpop.permute.xlu0 %303 }
 0x17a   :  { %v306_v49 = vmul.f32 %v2107_v47, %v304_v48  ;;  %v170_v48 = vadd.f32 %v1828_v20, %v2336_v41 }
 0x17c   :  { %308 = vrot.lane.b32.xlu1 %v306_v49, %s2225_s11 }
 0x1ee   :  { %v309_v50 = vpop.permute.xlu1 %308 }
 0x1ef   :  { %v311_v51 = vadd.f32 %v309_v50, %v155_v42 }
 0x1f1   :  { %2108 = vtanh.f32 %v311_v51 }
 0x1fb   :  { %v2109_v52 = vpop.eup %2108 }
 0x1fc   :  { %315 = vrot.lane.b32.xlu1 %v2109_v52, %s2226_s15 }
 0x26e   :  { %v316_v54 = vpop.permute.xlu1 %315 }
 0x26f   :  { %v318_v56 = vmul.f32 %v316_v54, %v313_v53 }
 0x271   :  { %v320_v57 = vadd.f32 %v319_v55, %v318_v56 }
 0x273   :  { %322 = vrot.lane.b32.xlu0 %v320_v57, %s2226_s15 }
 0x2e5   :  { %v323_v58 = vpop.permute.xlu0 %322 }
 0x2e6   :  { %1855 = vmatmul.mubr.msk.f32.vlgmr.msra.gmra.mrb[2].mxu1 %vm217_vm1, %v323_v58  ;;  %v61_v58 = vld [vmem:[%s2574_s0 + $0x20] sm:$0xff] }
 0x2e7   :  { %2013 = vmatpush3.bf16.msra.mxu1 %v2299_v9  ;;  %1865 = vmatprep.mubr.msk.f32.mxu1 %vm2223_vm0, %v2224_v1 }
 0x2e8   :  { %2014 = vmatprep.subr.bf16.mxu1 %v2222_v0  ;;  %1829 = vmatprep.mubr.f32.mxu0 %v61_v58 }
 0x2eb   :  { %2016 = vmatpush3.bf16.msra.mxu1 %v2302_v15 }
 0x2ec   :  { %2017 = vmatprep.subr.bf16.mxu1 %v2222_v0 }
 0x3b9   :  { %v392_v59 = vpop.f32.mrb[2].mxu1 }
 0x3ba   :  { %v403_v60 = vadd.f32 %v392_v59, %v2329_v35  ;;  %v1856_v61 = vpop.f32.mrb[3].mxu1  ;;  %v396_v63 = vadd.f32 %v392_v59, %v160_v62  ;;  %v62_v59 = vld [vmem:[%s2574_s0 + $0x28] sm:$0xff] }
 0x3bb   :  { %1830 = vmatmul.mubr.f32.gmra.mrb[4].mxu0 %v62_v59 }
 0x3bc   :  { %405 = vrot.lane.b32.xlu1 %v403_v60, %s2225_s11  ;;  %v1684_v2 = vmul.f32 -1.442695, %v396_v63 }
 0x3be   :  { %2110 = vpow2.f32 %v1684_v2 }
 0x3c8   :  { %v2111_v3 = vpop.eup %2110 }
 0x3c9   :  { %v400_v4 = vadd.f32 1.0, %v2111_v3 }
 0x3cb   :  { %2112 = vrcp.f32 %v400_v4 }
 0x3d5   :  { %v2113_v5 = vpop.eup %2112 }
 0x3d6   :  { %v415_v14 = vsub.f32 1.0, %v2113_v5  ;;  %v421_v17 = vmul.f32 %v2113_v5, %v320_v57 }
 0x42e   :  { %v406_v6 = vpop.permute.xlu1 %405 }
 0x42f   :  { %v408_v7 = vmul.f32 %v2113_v5, %v406_v6 }
 0x431   :  { %410 = vrot.lane.b32.xlu0 %v408_v7, %s2225_s11 }
 0x48e   :  { %v1831_v4 = vpop.f32.mrb[4].mxu0 }
 0x48f   :  { %v174_v5 = vpop.f32.mrb[5].mxu0 }
 0x490   :  { %v175_v11 = vadd.f32 %v2336_v41, %v174_v5 }
 0x4a3   :  { %v411_v8 = vpop.permute.xlu0 %410 }
 0x4a4   :  { %v413_v10 = vadd.f32 %v411_v8, %v160_v62 }
 0x4a6   :  { %2114 = vtanh.f32 %v413_v10 }
 0x4b0   :  { %v2115_v13 = vpop.eup %2114 }
 0x4b1   :  { %417 = vrot.lane.b32.xlu1 %v2115_v13, %s2226_s15 }
 0x523   :  { %v418_v16 = vpop.permute.xlu1 %417 }
 0x524   :  { %v420_v18 = vmul.f32 %v418_v16, %v415_v14 }
 0x526   :  { %v422_v19 = vadd.f32 %v421_v17, %v420_v18 }
 0x528   :  { %424 = vrot.lane.b32.xlu0 %v422_v19, %s2226_s15 }
 0x59a   :  { %v425_v22 = vpop.permute.xlu0 %424 }
 0x59b   :  { %1866 = vmatmul.mubr.msk.f32.vlgmr.msra.gmra.mrb[4].mxu1 %vm217_vm1, %v425_v22  ;;  %v63_v22 = vld [vmem:[%s2574_s0 + $0x30] sm:$0xff] }
 0x59c   :  { %2019 = vmatpush3.bf16.msra.mxu1 %v2299_v9  ;;  %1876 = vmatprep.mubr.msk.f32.mxu1 %vm2223_vm0, %v2224_v1 }
 0x59d   :  { %2020 = vmatprep.subr.bf16.mxu1 %v2222_v0  ;;  %1832 = vmatprep.mubr.f32.mxu0 %v63_v22 }
 0x5a0   :  { %2022 = vmatpush3.bf16.msra.mxu1 %v2302_v15 }
 0x5a1   :  { %2023 = vmatprep.subr.bf16.mxu1 %v2222_v0 }
 0x66e   :  { %v494_v23 = vpop.f32.mrb[4].mxu1 }
 0x66f   :  { %v505_v24 = vadd.f32 %v494_v23, %v2329_v35  ;;  %v1867_v25 = vpop.f32.mrb[5].mxu1  ;;  %v498_v27 = vadd.f32 %v494_v23, %v165_v26  ;;  %v64_v23 = vld [vmem:[%s2574_s0 + $0x38] sm:$0xff] }
 0x670   :  { %1833 = vmatmul.mubr.f32.gmra.mrb[6].mxu0 %v64_v23 }
 0x671   :  { %507 = vrot.lane.b32.xlu1 %v505_v24, %s2225_s11  ;;  %v1686_v28 = vmul.f32 -1.442695, %v498_v27  ;;  %1898 = vmatprep.mubr.msk.f32.mxu0 %vm2223_vm0, %v2224_v1 }
 0x673   :  { %2116 = vpow2.f32 %v1686_v28 }
 0x67d   :  { %v2117_v29 = vpop.eup %2116 }
 0x67e   :  { %v502_v30 = vadd.f32 1.0, %v2117_v29 }
 0x680   :  { %2118 = vrcp.f32 %v502_v30 }
 0x68a   :  { %v2119_v31 = vpop.eup %2118 }
 0x68b   :  { %v517_v38 = vsub.f32 1.0, %v2119_v31  ;;  %v523_v40 = vmul.f32 %v2119_v31, %v422_v19 }
 0x6e3   :  { %v508_v32 = vpop.permute.xlu1 %507 }
 0x6e4   :  { %v510_v33 = vmul.f32 %v2119_v31, %v508_v32 }
 0x6e6   :  { %512 = vrot.lane.b32.xlu0 %v510_v33, %s2225_s11 }
 0x743   :  { %v2413_v30 = vpop.f32.mrb[6].mxu0 }
 0x744   :  { %v184_v31 = vpop.f32.mrb[7].mxu0 }
 0x758   :  { %v513_v34 = vpop.permute.xlu0 %512 }
 0x759   :  { %v515_v36 = vadd.f32 %v513_v34, %v165_v26 }
 0x75b   :  { %2120 = vtanh.f32 %v515_v36 }
 0x765   :  { %v2121_v37 = vpop.eup %2120 }
 0x766   :  { %519 = vrot.lane.b32.xlu1 %v2121_v37, %s2226_s15  ;;  %v180_v37 = vadd.f32 %v1831_v4, %v2336_v41 }
 0x7d8   :  { %v520_v39 = vpop.permute.xlu1 %519 }
 0x7d9   :  { %v522_v42 = vmul.f32 %v520_v39, %v517_v38 }
 0x7db   :  { %v524_v43 = vadd.f32 %v523_v40, %v522_v42 }
 0x7dd   :  { %526 = vrot.lane.b32.xlu0 %v524_v43, %s2226_s15 }
 0x84f   :  { %v527_v44 = vpop.permute.xlu0 %526 }
 0x850   :  { %1877 = vmatmul.mubr.msk.f32.vlgmr.msra.gmra.mrb[6].mxu1 %vm217_vm1, %v527_v44 }
 0x851   :  { %2025 = vmatpush3.bf16.msra.mxu1 %v2299_v9  ;;  %1887 = vmatprep.mubr.msk.f32.mxu1 %vm2223_vm0, %v2224_v1 }
 0x852   :  { %2026 = vmatprep.subr.bf16.mxu1 %v2222_v0 }
 0x855   :  { %2028 = vmatpush3.bf16.msra.mxu1 %v2302_v15 }
 0x856   :  { %2035 = vmatprep.subr.bf16.mxu1 %v2222_v0 }
 0x923   :  { %v596_v45 = vpop.f32.mrb[6].mxu1 }
 0x924   :  { %v607_v46 = vadd.f32 %v596_v45, %v2329_v35  ;;  %v1878_v47 = vpop.f32.mrb[7].mxu1  ;;  %v600_v49 = vadd.f32 %v596_v45, %v170_v48 }
 0x926   :  { %609 = vrot.lane.b32.xlu1 %v607_v46, %s2225_s11  ;;  %v1688_v50 = vmul.f32 -1.442695, %v600_v49 }
 0x928   :  { %2122 = vpow2.f32 %v1688_v50 }
 0x932   :  { %v2123_v51 = vpop.eup %2122 }
 0x933   :  { %v604_v52 = vadd.f32 1.0, %v2123_v51 }
 0x935   :  { %2124 = vrcp.f32 %v604_v52 }
 0x93f   :  { %v2125_v53 = vpop.eup %2124 }
 0x940   :  { %v619_v61 = vsub.f32 1.0, %v2125_v53  ;;  %v625_v63 = vmul.f32 %v2125_v53, %v524_v43 }
 0x998   :  { %v610_v54 = vpop.permute.xlu1 %609 }
 0x999   :  { %v612_v55 = vmul.f32 %v2125_v53, %v610_v54 }
 0x99b   :  { %614 = vrot.lane.b32.xlu0 %v612_v55, %s2225_s11 }
 0xa0d   :  { %v615_v56 = vpop.permute.xlu0 %614 }
 0xa0e   :  { %v617_v57 = vadd.f32 %v615_v56, %v170_v48  ;;  %v185_v56 = vadd.f32 %v2336_v41, %v184_v31  ;;  %v1041_v31 = vld [vmem:[%s2577_s3 + $0x28] sm:$0xff] }
 0xa10   :  { %2126 = vtanh.f32 %v617_v57 }
 0xa1a   :  { %v2127_v60 = vpop.eup %2126 }
 0xa1b   :  { %621 = vrot.lane.b32.xlu1 %v2127_v60, %s2226_s15 }
 0xa8d   :  { %v622_v62 = vpop.permute.xlu1 %621 }
 0xa8e   :  { %v624_v2 = vmul.f32 %v622_v62, %v619_v61 }
 0xa90   :  { %v626_v3 = vadd.f32 %v625_v63, %v624_v2 }
 0xa92   :  { %628 = vrot.lane.b32.xlu0 %v626_v3, %s2226_s15 }
 0xb04   :  { %v629_v6 = vpop.permute.xlu0 %628 }
 0xb05   :  { %1888 = vmatmul.mubr.msk.f32.vlgmr.msra.gmra.mrb[8].mxu1 %vm217_vm1, %v629_v6 }
 0xb06   :  { %2037 = vmatpush3.bf16.msra.mxu1 %v2299_v9  ;;  %1909 = vmatprep.mubr.msk.f32.mxu1 %vm2223_vm0, %v2224_v1 }
 0xb07   :  { %2038 = vmatprep.subr.bf16.mxu1 %v2222_v0 }
 0xb0a   :  { %2040 = vmatpush3.bf16.msra.mxu1 %v2302_v15 }
 0xbd8   :  { %v698_v7 = vpop.f32.mrb[8].mxu1 }
 0xbd9   :  { %v709_v8 = vadd.f32 %v698_v7, %v2329_v35  ;;  %v1889_v10 = vpop.f32.mrb[9].mxu1  ;;  %v702_v12 = vadd.f32 %v698_v7, %v175_v11 }
 0xbdb   :  { %711 = vrot.lane.b32.xlu1 %v709_v8, %s2225_s11  ;;  %v1690_v13 = vmul.f32 -1.442695, %v702_v12 }
 0xbdd   :  { %2128 = vpow2.f32 %v1690_v13 }
 0xbe7   :  { %v2129_v14 = vpop.eup %2128 }
 0xbe8   :  { %v706_v16 = vadd.f32 1.0, %v2129_v14 }
 0xbea   :  { %2130 = vrcp.f32 %v706_v16  ;;  %v2443_v16 = vadd.f32 %v2413_v30, %v2336_v41  ;;  %v1037_v41 = vld [vmem:[%s2577_s3 + $0x8] sm:$0xff]  ;;  %v1038_v30 = vld [vmem:[%s2577_s3 + $0x10] sm:$0xff] }
 0xbf4   :  { %v2131_v17 = vpop.eup %2130 }
 0xbf5   :  { %v721_v25 = vsub.f32 1.0, %v2131_v17  ;;  %v727_v27 = vmul.f32 %v2131_v17, %v626_v3 }
 0xc4d   :  { %v712_v18 = vpop.permute.xlu1 %711 }
 0xc4e   :  { %v714_v19 = vmul.f32 %v2131_v17, %v712_v18 }
 0xc50   :  { %716 = vrot.lane.b32.xlu0 %v714_v19, %s2225_s11 }
 0xcc2   :  { %v717_v20 = vpop.permute.xlu0 %716 }
 0xcc3   :  { %v719_v21 = vadd.f32 %v717_v20, %v175_v11 }
 0xcc5   :  { %2132 = vtanh.f32 %v719_v21 }
 0xccf   :  { %v2133_v24 = vpop.eup %2132 }
 0xcd0   :  { %723 = vrot.lane.b32.xlu1 %v2133_v24, %s2226_s15 }
 0xd42   :  { %v724_v26 = vpop.permute.xlu1 %723 }
 0xd43   :  { %v726_v28 = vmul.f32 %v724_v26, %v721_v25  ;;  %v1040_v26 = vld [vmem:[%s2577_s3 + $0x20] sm:$0xff] }
 0xd45   :  { %v728_v29 = vadd.f32 %v727_v27, %v726_v28  ;;  %v1036_v27 = vld [vmem:[%s2577_s3] sm:$0xff]  ;;  %v2047_v28 = vpack.c.bf16 %v1040_v26, %v1037_v41 }
 0xd47   :  { %730 = vrot.lane.b32.xlu0 %v728_v29, %s2226_s15  ;;  %2048 = vmatprep.subr.bf16.mxu1 %v2047_v28 }
 0xdb9   :  { %v731_v32 = vpop.permute.xlu0 %730 }
 0xdba   :  { %1899 = vmatmul.mubr.msk.f32.vlgmr.msra.gmra.mrb[8].mxu0 %vm217_vm1, %v731_v32 }
 0xdbb   :  { %2043 = vmatpush3.bf16.msra.mxu0 %v2299_v9  ;;  %1920 = vmatprep.mubr.msk.f32.mxu0 %vm2223_vm0, %v2224_v1 }
 0xdbc   :  { %2044 = vmatprep.subr.bf16.mxu0 %v2222_v0 }
 0xdbf   :  { %2046 = vmatpush3.bf16.msra.mxu0 %v2302_v15 }
 0xdc0   :  { %2055 = vmatprep.subr.bf16.mxu0 %v2222_v0 }
 0xe8d   :  { %v800_v33 = vpop.f32.mrb[8].mxu0 }
 0xe8e   :  { %v811_v34 = vadd.f32 %v800_v33, %v2329_v35  ;;  %v1900_v36 = vpop.f32.mrb[9].mxu0  ;;  %v804_v38 = vadd.f32 %v800_v33, %v180_v37  ;;  %v2468_v33 = vpack.c.bf16 %v1041_v31, %v1038_v30 }
 0xe8f   :  { %v1046_v36 = vld [vmem:[%s2577_s3 + $0x50] sm:$0xff] }
 0xe90   :  { %813 = vrot.lane.b32.xlu1 %v811_v34, %s2225_s11  ;;  %v1692_v39 = vmul.f32 -1.442695, %v804_v38  ;;  %v1043_v34 = vld [vmem:[%s2577_s3 + $0x38] sm:$0xff] }
 0xe91   :  { %v2479_v38 = vpack.c.bf16 %v1046_v36, %v1043_v34 }
 0xe92   :  { %2134 = vpow2.f32 %v1692_v39  ;;  %v1045_v39 = vld [vmem:[%s2577_s3 + $0x48] sm:$0xff] }
 0xe9c   :  { %v2135_v9 = vpop.eup %2134 }
 0xe9d   :  { %v808_v40 = vadd.f32 1.0, %v2135_v9  ;;  %v1044_v9 = vld [vmem:[%s2577_s3 + $0x40] sm:$0xff] }
 0xe9f   :  { %2136 = vrcp.f32 %v808_v40  ;;  %v1047_v40 = vld [vmem:[%s2577_s3 + $0x58] sm:$0xff] }
 0xea9   :  { %v2137_v42 = vpop.eup %2136 }
 0xeaa   :  { %v823_v47 = vsub.f32 1.0, %v2137_v42  ;;  %v829_v49 = vmul.f32 %v2137_v42, %v728_v29  ;;  %v1039_v29 = vld [vmem:[%s2577_s3 + $0x18] sm:$0xff] }
 0xeab   :  { %v2466_v32 = vpack.c.bf16 %v1039_v29, %v1036_v27 }
 0xf02   :  { %v814_v43 = vpop.permute.xlu1 %813 }
 0xf03   :  { %v816_v44 = vmul.f32 %v2137_v42, %v814_v43  ;;  %v2494_v43 = vpack.c.bf16 %v1047_v40, %v1044_v9 }
 0xf05   :  { %818 = vrot.lane.b32.xlu0 %v816_v44, %s2225_s11 }
 0xf77   :  { %v819_v15 = vpop.permute.xlu0 %818 }
 0xf78   :  { %v821_v45 = vadd.f32 %v819_v15, %v180_v37  ;;  %v1042_v37 = vld [vmem:[%s2577_s3 + $0x30] sm:$0xff] }
 0xf79   :  { %v2492_v42 = vpack.c.bf16 %v1045_v39, %v1042_v37 }
 0xf7a   :  { %2138 = vtanh.f32 %v821_v45 }
 0xf84   :  { %v2139_v46 = vpop.eup %2138 }
 0xf85   :  { %825 = vrot.lane.b32.xlu1 %v2139_v46, %s2226_s15 }
 0xff7   :  { %v826_v48 = vpop.permute.xlu1 %825 }
 0xff8   :  { %v828_v50 = vmul.f32 %v826_v48, %v823_v47 }
 0xffa   :  { %v830_v51 = vadd.f32 %v829_v49, %v828_v50 }
 0xffc   :  { %832 = vrot.lane.b32.xlu0 %v830_v51, %s2226_s15 }
0x106e   :  { %v833_v52 = vpop.permute.xlu0 %832 }
0x106f   :  { %1910 = vmatmul.mubr.msk.f32.vlgmr.msra.gmra.mrb[10].mxu1 %vm217_vm1, %v833_v52 }
0x1070   :  { %1117 = vmatprep.mubr.f32.mxu1 %v2224_v1  ;;  %2050 = vmatpush1.bf16.msra.mxu1 %v2466_v32 }
0x1071   :  { %2052 = vmatprep.subr.bf16.mxu1 %v2479_v38 }
0x1074   :  { %2054 = vmatpush1.bf16.msra.mxu1 %v2492_v42 }
0x1075   :  { %2062 = vmatprep.subr.bf16.mxu1 %v2047_v28 }
0x1142   :  { %v902_v53 = vpop.f32.mrb[10].mxu1 }
0x1143   :  { %v913_v54 = vadd.f32 %v902_v53, %v2329_v35  ;;  %v1911_v55 = vpop.f32.mrb[11].mxu1  ;;  %v906_v57 = vadd.f32 %v902_v53, %v185_v56 }
0x1145   :  { %915 = vrot.lane.b32.xlu1 %v913_v54, %s2225_s11  ;;  %v1694_v58 = vmul.f32 -1.442695, %v906_v57 }
0x1147   :  { %2140 = vpow2.f32 %v1694_v58 }
0x1151   :  { %v2141_v59 = vpop.eup %2140 }
0x1152   :  { %v910_v60 = vadd.f32 1.0, %v2141_v59 }
0x1154   :  { %2142 = vrcp.f32 %v910_v60 }
0x115e   :  { %v2143_v61 = vpop.eup %2142 }
0x115f   :  { %v925_v5 = vsub.f32 1.0, %v2143_v61  ;;  %v931_v7 = vmul.f32 %v2143_v61, %v830_v51 }
0x11b7   :  { %v916_v62 = vpop.permute.xlu1 %915 }
0x11b8   :  { %v918_v63 = vmul.f32 %v2143_v61, %v916_v62 }
0x11ba   :  { %920 = vrot.lane.b32.xlu0 %v918_v63, %s2225_s11 }
0x122c   :  { %v921_v2 = vpop.permute.xlu0 %920 }
0x122d   :  { %v923_v3 = vadd.f32 %v921_v2, %v185_v56  ;;  %v2521_v56 = vld [vmem:[%s2581_s7] ss:$0 sm:$0xff] }
0x122f   :  { %2144 = vtanh.f32 %v923_v3 }
0x1239   :  { %v2145_v4 = vpop.eup %2144 }
0x123a   :  { %927 = vrot.lane.b32.xlu1 %v2145_v4, %s2226_s15 }
0x12ac   :  { %v928_v6 = vpop.permute.xlu1 %927 }
0x12ad   :  { %v930_v8 = vmul.f32 %v928_v6, %v925_v5 }
0x12af   :  { %v932_v10 = vadd.f32 %v931_v7, %v930_v8 }
0x12b1   :  { %935 = vrot.lane.b32.xlu0 %v932_v10, %s2226_s15 }
0x1323   :  { %v936_v11 = vpop.permute.xlu0 %935 }
0x1324   :  { %1921 = vmatmul.mubr.msk.f32.vlgmr.msra.gmra.mrb[10].mxu0 %vm217_vm1, %v936_v11 }
0x1325   :  { %1931 = vmatprep.mubr.msk.f32.mxu0 %vm2223_vm0, %v2224_v1  ;;  %2057 = vmatpush3.bf16.msra.mxu0 %v2468_v33 }
0x1326   :  { %2058 = vmatprep.subr.bf16.mxu0 %v2222_v0 }
0x1329   :  { %2060 = vmatpush3.bf16.msra.mxu0 %v2494_v43 }
0x132a   :  { %2069 = vmatprep.subr.bf16.mxu0 %v2222_v0 }
0x13f7   :  { %v1005_v12 = vpop.f32.mrb[10].mxu0 }
0x13f8   :  { %v1016_v13 = vadd.f32 %v1005_v12, %v2329_v35  ;;  %v1922_v14 = vpop.f32.mrb[11].mxu0  ;;  %v1009_v17 = vadd.f32 %v1005_v12, %v2443_v16 }
0x13fa   :  { %1018 = vrot.lane.b32.xlu1 %v1016_v13, %s2225_s11  ;;  %v1696_v18 = vmul.f32 -1.442695, %v1009_v17  ;;  %v933_v13 = vld [vmem:[%s2574_s0 + $0x38] sm:$0x3] }
0x13fc   :  { %2146 = vpow2.f32 %v1696_v18 }
0x1406   :  { %v2147_v19 = vpop.eup %2146 }
0x1407   :  { %v1013_v20 = vadd.f32 1.0, %v2147_v19 }
0x1409   :  { %2148 = vrcp.f32 %v1013_v20 }
0x1413   :  { %v2149_v21 = vpop.eup %2148 }
0x1414   :  { %v1028_v15 = vsub.f32 1.0, %v2149_v21  ;;  %v1034_v46 = vmul.f32 %v2149_v21, %v932_v10 }
0x146c   :  { %v1019_v22 = vpop.permute.xlu1 %1018 }
0x146d   :  { %v1021_v23 = vmul.f32 %v2149_v21, %v1019_v22 }
0x146f   :  { %1023 = vrot.lane.b32.xlu0 %v1021_v23, %s2225_s11 }
0x14e1   :  { %v1024_v24 = vpop.permute.xlu0 %1023 }
0x14e2   :  { %v1026_v25 = vadd.f32 %v1024_v24, %v2443_v16 }
0x14e4   :  { %2150 = vtanh.f32 %v1026_v25 }
0x14ee   :  { %v2151_v44 = vpop.eup %2150 }
0x14ef   :  { %1030 = vrot.lane.b32.xlu1 %v2151_v44, %s2226_s15 }
0x1561   :  { %v1031_v45 = vpop.permute.xlu1 %1030 }
0x1562   :  { %v1033_v47 = vmul.f32 %v1031_v45, %v1028_v15 }
0x1564   :  { %v1035_v48 = vadd.f32 %v1034_v46, %v1033_v47 }
0x1566   :  { %1049 = vrot.lane.b32.xlu0 %v1035_v48, %s2226_s15 }
0x15d8   :  { %v1050_v49 = vpop.permute.xlu0 %1049 }
0x15d9   :  { %1697 = vmatmul.mubr.msk.f32.vlgmr.msra.gmra.mrb[12].mxu1 %vm217_vm1, %v1050_v49  ;;  %1932 = vmatmul.mubr.msk.f32.vlgmr.msra.gmra.mrb[12].mxu0 %vm217_vm1, %v1050_v49 }
0x15da   :  { %2064 = vmatpush1.bf16.msra.mxu1 %v2466_v32  ;;  %2071 = vmatpush3.bf16.msra.mxu0 %v2468_v33 }
0x15db   :  { %2066 = vmatprep.subr.bf16.mxu1 %v2479_v38  ;;  %2072 = vmatprep.subr.bf16.mxu0 %v2222_v0 }
0x15dc   :  { %1294 = vmatprep.mubr.f32.mxu1 %v2224_v1  ;;  %1942 = vmatprep.mubr.msk.f32.mxu0 %vm2223_vm0, %v2224_v1 }
0x15de   :  { %2068 = vmatpush1.bf16.msra.mxu1 %v2492_v42  ;;  %2074 = vmatpush3.bf16.msra.mxu0 %v2494_v43 }
0x15df   :  { %2076 = vmatprep.subr.bf16.mxu1 %v2047_v28  ;;  %2083 = vmatprep.subr.bf16.mxu0 %v2222_v0 }
0x16ac   :  { %v1119_v50 = vpop.f32.mrb[12].mxu1  ;;  %v1190_v51 = vpop.f32.mrb[12].mxu0 }
0x16ad   :  { %v1205_v52 = vadd.f32 %v1119_v50, %v2329_v35  ;;  %v1121_v53 = vpop.f32.mrb[13].mxu1  ;;  %v1933_v54 = vpop.f32.mrb[13].mxu0  ;;  %v1194_v14 = vadd.f32 %v1190_v51, %v933_v13 }
0x16ae   :  { %v1196_v55 = vadd.f32 %v1121_v53, %v2443_v16  ;;  %v2545_v16 = vld [vmem:[%s2580_s6] ss:$0 sm:$0xff] }
0x16af   :  { %1207 = vrot.lane.b32.xlu1 %v1205_v52, %s2225_s11  ;;  %v1195_v17 = vadd.f32 %v2545_v16, %v1194_v14 }
0x16b0   :  { %v1197_v57 = vadd.f32 %v2521_v56, %v1196_v55 }
0x16b2   :  { %v1198_v58 = vadd.f32 %v1197_v57, %v1119_v50 }
0x16b4   :  { %v1699_v59 = vmul.f32 -1.442695, %v1198_v58 }
0x16b6   :  { %2152 = vpow2.f32 %v1699_v59 }
0x16c0   :  { %v2153_v60 = vpop.eup %2152 }
0x16c1   :  { %v1202_v61 = vadd.f32 1.0, %v2153_v60 }
0x16c3   :  { %2154 = vrcp.f32 %v1202_v61 }
0x16cd   :  { %v2155_v62 = vpop.eup %2154 }
0x16ce   :  { %v1217_v6 = vsub.f32 1.0, %v2155_v62  ;;  %v1223_v8 = vmul.f32 %v2155_v62, %v1035_v48 }
0x1721   :  { %v1208_v63 = vpop.permute.xlu1 %1207 }
0x1722   :  { %v1210_v2 = vmul.f32 %v2155_v62, %v1208_v63 }
0x1724   :  { %1212 = vrot.lane.b32.xlu0 %v1210_v2, %s2225_s11 }
0x1796   :  { %v1213_v3 = vpop.permute.xlu0 %1212 }
0x1797   :  { %v1215_v4 = vadd.f32 %v1213_v3, %v1197_v57 }
0x1799   :  { %2156 = vtanh.f32 %v1215_v4 }
0x17a3   :  { %v2157_v5 = vpop.eup %2156 }
0x17a4   :  { %1219 = vrot.lane.b32.xlu1 %v2157_v5, %s2226_s15 }
0x1816   :  { %v1220_v7 = vpop.permute.xlu1 %1219 }
0x1817   :  { %v1222_v10 = vmul.f32 %v1220_v7, %v1217_v6 }
0x1819   :  { %v1224_v11 = vadd.f32 %v1223_v8, %v1222_v10 }
0x181b   :  { %1226 = vrot.lane.b32.xlu0 %v1224_v11, %s2226_s15 }
0x188d   :  { %v1227_v12 = vpop.permute.xlu0 %1226 }
0x188e   :  { %1700 = vmatmul.mubr.msk.f32.vlgmr.msra.gmra.mrb[14].mxu1 %vm217_vm1, %v1227_v12  ;;  %1943 = vmatmul.mubr.msk.f32.vlgmr.msra.gmra.mrb[14].mxu0 %vm217_vm1, %v1227_v12 }
0x188f   :  { %2078 = vmatpush1.bf16.msra.mxu1 %v2466_v32  ;;  %2085 = vmatpush3.bf16.msra.mxu0 %v2468_v33 }
0x1890   :  { %2080 = vmatprep.subr.bf16.mxu1 %v2479_v38  ;;  %2086 = vmatprep.subr.bf16.mxu0 %v2222_v0 }
0x1891   :  { %1471 = vmatprep.mubr.f32.mxu1 %v2224_v1  ;;  %1953 = vmatprep.mubr.msk.f32.mxu0 %vm2223_vm0, %v2224_v1 }
0x1893   :  { %2082 = vmatpush1.bf16.msra.mxu1 %v2492_v42  ;;  %2088 = vmatpush3.bf16.msra.mxu0 %v2494_v43 }
0x1894   :  { %2089 = vmatprep.subr.bf16.mxu1 %v2222_v0 }
0x1961   :  { %v1296_v18 = vpop.f32.mrb[14].mxu1  ;;  %v1367_v19 = vpop.f32.mrb[14].mxu0 }
0x1962   :  { %v1382_v20 = vadd.f32 %v1296_v18, %v2329_v35  ;;  %v1371_v21 = vadd.f32 %v1367_v19, %v1195_v17  ;;  %v1298_v22 = vpop.f32.mrb[15].mxu1  ;;  %v1944_v23 = vpop.f32.mrb[15].mxu0 }
0x1963   :  { %v1373_v26 = vadd.f32 %v1298_v22, %v1197_v57 }
0x1964   :  { %1384 = vrot.lane.b32.xlu1 %v1382_v20, %s2225_s11  ;;  %v1372_v24 = vadd.f32 %v2545_v16, %v1371_v21 }
0x1965   :  { %v1374_v27 = vadd.f32 %v2521_v56, %v1373_v26 }
0x1966   :  { %v1657_v25 = vrot.slane %v1372_v24, 6 }
0x1967   :  { %v1375_v28 = vadd.f32 %v1374_v27, %v1296_v18 }
0x1968   :  { %v1666_v41 = vsel %vm1665_vm2, %v1195_v17, %v1657_v25 }
0x1969   :  { %v1702_v29 = vmul.f32 -1.442695, %v1375_v28 }
0x196b   :  { %2158 = vpow2.f32 %v1702_v29 }
0x1975   :  { %v2159_v30 = vpop.eup %2158 }
0x1976   :  { %v1379_v31 = vadd.f32 1.0, %v2159_v30 }
0x1978   :  { %2160 = vrcp.f32 %v1379_v31 }
0x1982   :  { %v2161_v32 = vpop.eup %2160 }
0x1983   :  { %v1394_v9 = vsub.f32 1.0, %v2161_v32  ;;  %v1400_v42 = vmul.f32 %v2161_v32, %v1224_v11 }
0x19d6   :  { %v1385_v34 = vpop.permute.xlu1 %1384 }
0x19d7   :  { %v1387_v36 = vmul.f32 %v2161_v32, %v1385_v34 }
0x19d9   :  { %1389 = vrot.lane.b32.xlu0 %v1387_v36, %s2225_s11 }
0x1a4b   :  { %v1390_v37 = vpop.permute.xlu0 %1389 }
0x1a4c   :  { %v1392_v38 = vadd.f32 %v1390_v37, %v1374_v27 }
0x1a4e   :  { %2162 = vtanh.f32 %v1392_v38 }
0x1a58   :  { %v2163_v39 = vpop.eup %2162 }
0x1a59   :  { %1396 = vrot.lane.b32.xlu1 %v2163_v39, %s2226_s15 }
0x1acb   :  { %v1397_v40 = vpop.permute.xlu1 %1396 }
0x1acc   :  { %v1399_v44 = vmul.f32 %v1397_v40, %v1394_v9 }
0x1ace   :  { %v1401_v15 = vadd.f32 %v1400_v42, %v1399_v44 }
0x1ad0   :  { %1403 = vrot.lane.b32.xlu0 %v1401_v15, %s2226_s15 }
0x1b42   :  { %v1404_v45 = vpop.permute.xlu0 %1403 }
0x1b43   :  { %1703 = vmatmul.mubr.msk.f32.vlgmr.msra.gmra.mrb[16].mxu1 %vm217_vm1, %v1404_v45  ;;  %1954 = vmatmul.mubr.msk.f32.vlgmr.msra.gmra.mrb[16].mxu0 %vm217_vm1, %v1404_v45 }
0x1b44   :  { %2091 = vmatpush3.bf16.msra.mxu1 %v2468_v33  ;;  %1964 = vmatprep.mubr.msk.f32.mxu1 %vm2223_vm0, %v2224_v1 }
0x1b45   :  { %2092 = vmatprep.subr.bf16.mxu1 %v2222_v0 }
0x1b48   :  { %2094 = vmatpush3.bf16.msra.mxu1 %v2494_v43 }
0x1c16   :  { %v1473_v46 = vpop.f32.mrb[16].mxu1  ;;  %v1544_v47 = vpop.f32.mrb[16].mxu0 }
0x1c17   :  { %v1559_v48 = vadd.f32 %v1473_v46, %v2329_v35  ;;  %v1548_v49 = vadd.f32 %v1544_v47, %v1372_v24  ;;  %v1475_v50 = vpop.f32.mrb[17].mxu1  ;;  %v1955_v51 = vpop.f32.mrb[17].mxu0 }
0x1c18   :  { %v1550_v54 = vadd.f32 %v1475_v50, %v1374_v27 }
0x1c19   :  { %1561 = vrot.lane.b32.xlu1 %v1559_v48, %s2225_s11  ;;  %v1549_v52 = vadd.f32 %v2545_v16, %v1548_v49 }
0x1c1a   :  { %v1551_v1 = vadd.f32 %v2521_v56, %v1550_v54 }
0x1c1b   :  { %v1660_v33 = vrot.slane %v1549_v52, 4 }
0x1c1c   :  { %v1552_v0 = vadd.f32 %v1551_v1, %v1473_v46 }
0x1c1d   :  { %v1668_v53 = vsel %vm1667_vm3, %v1666_v41, %v1660_v33 }
0x1c1e   :  { %v1705_v55 = vmul.f32 -1.442695, %v1552_v0 }
0x1c20   :  { %2164 = vpow2.f32 %v1705_v55 }
0x1c2a   :  { %v2165_v43 = vpop.eup %2164 }
0x1c2b   :  { %v1556_v57 = vadd.f32 1.0, %v2165_v43 }
0x1c2d   :  { %2166 = vrcp.f32 %v1556_v57 }
0x1c37   :  { %v2167_v35 = vpop.eup %2166 }
0x1c38   :  { %v1571_v63 = vsub.f32 1.0, %v2167_v35  ;;  %v1577_v56 = vmul.f32 %v2167_v35, %v1401_v15 }
0x1c8b   :  { %v1562_v58 = vpop.permute.xlu1 %1561 }
0x1c8c   :  { %v1564_v59 = vmul.f32 %v2167_v35, %v1562_v58 }
0x1c8e   :  { %1566 = vrot.lane.b32.xlu0 %v1564_v59, %s2225_s11 }
0x1d00   :  { %v1567_v60 = vpop.permute.xlu0 %1566 }
0x1d01   :  { %v1569_v61 = vadd.f32 %v1567_v60, %v1551_v1 }
0x1d03   :  { %2168 = vtanh.f32 %v1569_v61 }
0x1d0d   :  { %v2169_v62 = vpop.eup %2168 }
0x1d0e   :  { %1573 = vrot.lane.b32.xlu1 %v2169_v62, %s2226_s15 }
0x1d80   :  { %v1574_v2 = vpop.permute.xlu1 %1573 }
0x1d81   :  { %v1576_v3 = vmul.f32 %v1574_v2, %v1571_v63 }
0x1d83   :  { %v1578_v4 = vadd.f32 %v1577_v56, %v1576_v3 }
0x1d85   :  { %1580 = vrot.lane.b32.xlu0 %v1578_v4, %s2226_s15 }
0x1df7   :  { %v1581_v5 = vpop.permute.xlu0 %1580 }
0x1df8   :  { %1965 = vmatmul.mubr.msk.f32.vlgmr.msra.gmra.mrb[18].mxu1 %vm217_vm1, %v1581_v5 }
0x1ecb   :  { %v1650_v6 = vpop.f32.mrb[18].mxu1 }
0x1ecc   :  { %v1654_v7 = vadd.f32 %v1650_v6, %v1549_v52  ;;  %v1966_v8 = vpop.f32.mrb[19].mxu1 }
0x1ece   :  { %v1655_v10 = vadd.f32 %v2545_v16, %v1654_v7 }
0x1ed0   :  { %v1663_v11 = vrot.slane %v1655_v10, 2 }
0x1ed2   :  { %v1670_v12 = vsel %vm1669_vm4, %v1668_v53, %v1663_v11 }
0x1ed3   :  { %1671 = vst [vmem:[%s2582_s8] sm:$0xff] %v1670_v12 }
0x1ed4   :  { %1676 = vsyncpa [#allocation3], 1 }
0x1ed5   :  { %1677 = vsyncpa [#allocation5], 1 }

</bundles_post_ra>
